<compile_context>
chip_gen: v7x
topology: tpu7x:2x2x1
jax: 0.10.0
libtpu: 0.0.40
codegen_flags: <defaults>
</compile_context>

<pallas_src>
import numpy as np
import jax
import jax.numpy as jnp
from jax.experimental import pallas as pl
from jax.experimental.pallas import tpu as pltpu

_PREFIX_ROWS = 8          # prefix occupies row 0 of an aligned 8-row tile of the stack
_TARGET_OUT_BLOCK_BYTES = 2 * 1024 * 1024
_MAX_CLASS_BLOCK = 16


def _round_up(x, m):
    return ((x + m - 1) // m) * m


def _make_kernel(*, bc, p, n_ctx, s_suf, seq, n_end, n_mid, n_front, k_pad):
    """Kernel factory: all structural parameters are closed over as Python ints."""
    n_fm = n_mid + n_front
    half = n_ctx // 2
    ctx_base = _PREFIX_ROWS
    suf_base = _PREFIX_ROWS + p * n_ctx
    k_used = suf_base + s_suf

    def kernel(nlen_ref, prefix_ref, suffix_ref, ctx_ref, out_ref, *scratch):
        blk = pl.program_id(0)
        d = out_ref.shape[-1]

        # ---- 'end' prompts (pos==2): static layout -> direct VMEM stores, no MXU ----
        for c in range(bc):
            pre_c = prefix_ref[c].astype(out_ref.dtype)          # (1, D)
            suf_c = suffix_ref[c].astype(out_ref.dtype)          # (s_suf, D)
            for j in range(n_end):
                base = j * seq
                out_ref[c, pl.ds(base, 1), :] = pre_c
                out_ref[c, pl.ds(base + 1, n_ctx), :] = ctx_ref[j].astype(out_ref.dtype)
                out_ref[c, pl.ds(base + 1 + n_ctx, s_suf), :] = suf_c

        if n_fm == 0:
            return
        stack_ref = scratch[0]

        # ---- class-invariant stack regions: written once per grid STEP ----
        # zero the never-selected rows (0 * uninitialized-NaN would poison the matmul)
        stack_ref[pl.ds(0, _PREFIX_ROWS), :] = jnp.zeros((_PREFIX_ROWS, d), jnp.float32)
        if k_pad > k_used:
            stack_ref[pl.ds(k_used, k_pad - k_used), :] = jnp.zeros((k_pad - k_used, d),
                                                                    jnp.float32)
        for j in range(p):   # ctx slab, sublane-aligned 8-row stores
            stack_ref[pl.ds(ctx_base + j * n_ctx, n_ctx), :] = ctx_ref[j].astype(jnp.float32)

        # ---- selection-index math: lane-dense, hoisted out of the class loop ----
        t = jax.lax.broadcasted_iota(jnp.int32, (n_fm, seq), 1)       # token position
        j_loc = jax.lax.broadcasted_iota(jnp.int32, (n_fm, seq), 0)   # local fm prompt idx
        is_mid = j_loc < n_mid                # prompts pre-sorted [end | mid | front]
        j_glob = j_loc + n_end
        cols = jax.lax.broadcasted_iota(jnp.int32, (n_fm, seq, k_pad), 2)

        # ---- front/middle prompts: per-class selection matmul ----
        for c in range(bc):
            nl = nlen_ref[blk * bc + c]       # class-name token length (dynamic scalar)

            # per-class rows of the stack
            stack_ref[pl.ds(0, 1), :] = prefix_ref[c].astype(jnp.float32)
            stack_ref[pl.ds(suf_base, s_suf), :] = suffix_ref[c].astype(jnp.float32)

            # virtual index into the per-prompt layout [prefix(1) | ctx(n_ctx) | suffix(s_suf)]
            idx_mid = jnp.where(
                t < 1 + half, t,
                jnp.where(t < 1 + half + nl, t + (n_ctx - half),
                          jnp.where(t < 1 + n_ctx + nl, t - nl, t)))
            idx_fro = jnp.where(
                t < 1, t,
                jnp.where(t < 1 + nl, t + n_ctx,
                          jnp.where(t < 1 + nl + n_ctx, t - nl, t)))
            v = jnp.where(is_mid, idx_mid, idx_fro)
            src = jnp.where(v == 0, 0,
                            jnp.where(v <= n_ctx, ctx_base + j_glob * n_ctx + (v - 1),
                                      suf_base + (v - 1 - n_ctx)))            # (n_fm, seq)

            onehot = (cols == src[:, :, None]).astype(jnp.float32)            # (n_fm, seq, K)
            sel = jnp.dot(onehot.reshape(n_fm * seq, k_pad), stack_ref[...],
                          preferred_element_type=jnp.float32)
            out_ref[c, pl.ds(n_end * seq, n_fm * seq), :] = sel.astype(out_ref.dtype)

    return kernel


def build_prompts(token_prefix, token_suffix, ctx, n_end, n_mid, name_lens,
                  *, class_block=None):
    """token_prefix: (n_cls, 1, D); token_suffix: (n_cls, S_suf, D);
       ctx: (P, n_ctx, D) already ordered [end | middle | front];
       n_end / n_mid: static prompt counts; name_lens: (n_cls,) int32.
       Returns (n_cls, P*seq, D), seq = 1 + n_ctx + S_suf (class-major rows)."""
    n_cls, _, dim = token_prefix.shape
    p, n_ctx, _ = ctx.shape
    s_suf = token_suffix.shape[1]
    seq = 1 + n_ctx + s_suf
    n_front = p - n_end - n_mid
    n_fm = n_mid + n_front
    assert 0 <= n_end <= p and n_front >= 0
    assert dim % 128 == 0, "ctx_dim must be a multiple of 128 for lane-dense stores"
    assert name_lens.shape[0] == n_cls
    if n_fm > 0 and not isinstance(name_lens, jax.core.Tracer):
        assert int(jnp.max(name_lens)) <= s_suf, "class-name tokens must fit in the suffix"

    k_used = _PREFIX_ROWS + p * n_ctx + s_suf
    k_pad = _round_up(k_used, 128)    # lane-dense one-hot, clean MXU contraction tile

    # --- class blocking: amortize per-grid-step overhead over Bc classes -------------
    if class_block is None:
        per_class_bytes = p * seq * dim * token_prefix.dtype.itemsize
        class_block = max(1, min(n_cls, _TARGET_OUT_BLOCK_BYTES // max(per_class_bytes, 1)))
        class_block = min(class_block, _MAX_CLASS_BLOCK)
        if n_cls >= 2:                 # keep >=2 grid steps so v7x megacore splits classes
            class_block = min(class_block, pl.cdiv(n_cls, 2))
    bc = int(class_block)
    n_blocks = pl.cdiv(n_cls, bc)
    n_cls_pad = n_blocks * bc

    name_lens = name_lens.astype(jnp.int32)
    if n_cls_pad != n_cls:
        pad = n_cls_pad - n_cls
        token_prefix = jnp.pad(token_prefix, ((0, pad), (0, 0), (0, 0)))
        token_suffix = jnp.pad(token_suffix, ((0, pad), (0, 0), (0, 0)))
        name_lens = jnp.pad(name_lens, ((0, pad),), constant_values=1)

    kernel = _make_kernel(bc=bc, p=p, n_ctx=n_ctx, s_suf=s_suf, seq=seq,
                          n_end=n_end, n_mid=n_mid, n_front=n_front, k_pad=k_pad)
    scratch = [pltpu.VMEM((k_pad, dim), jnp.float32)] if n_fm > 0 else []

    grid_spec = pltpu.PrefetchScalarGridSpec(
        num_scalar_prefetch=1,
        grid=(n_blocks,),
        in_specs=[
            pl.BlockSpec((bc, 1, dim), lambda i, nl: (i, 0, 0)),          # prefix block
            pl.BlockSpec((bc, s_suf, dim), lambda i, nl: (i, 0, 0)),      # suffix block
            pl.BlockSpec((p, n_ctx, dim), lambda i, nl: (0, 0, 0)),       # ctx: DMA'd once
        ],
        out_specs=pl.BlockSpec((bc, p * seq, dim), lambda i, nl: (i, 0, 0)),
        scratch_shapes=scratch,
    )
    out = pl.pallas_call(
        kernel,
        out_shape=jax.ShapeDtypeStruct((n_cls_pad, p * seq, dim), token_prefix.dtype),
        grid_spec=grid_spec,
        compiler_params=pltpu.CompilerParams(
            dimension_semantics=("parallel",)),       # classes split across TensorCores
    )(name_lens, token_prefix, token_suffix, ctx)
    return out[:n_cls]


class PromptLearnerPallas:
    def __init__(self, predicate_labels, n_ctx=8, n_prompt=8, prompt_bsz=4,
                 ctx_dim=128, seq_len=24, key=None):
        assert n_prompt % prompt_bsz == 0
        if key is None:
            key = jax.random.PRNGKey(0)
        k_ctx, k_emb, k_nc, k_tok, k_nctok, self._perm_key = jax.random.split(key, 6)

        n_cls = len(predicate_labels)
        self.n_cls = n_cls
        self.n_ctx = n_ctx
        self.n_prompt = n_prompt
        self.ctx_dim = ctx_dim
        self.prompt_bsz = prompt_bsz
        self.n_iter = n_prompt // prompt_bsz
        self.iter_idx = 0
        self.dtype = jnp.float32

        # nn.init.normal_(std=0.02)
        self.ctx = (0.02 * jax.random.normal(k_ctx, (n_prompt, n_ctx, ctx_dim))).astype(self.dtype)

        if n_prompt > 1:
            pos = [0] * (n_prompt // 4) + [1] * (n_prompt // 4) + [2] * (n_prompt // 2)
        else:
            pos = [2] * n_prompt
        self.pos = jnp.asarray(pos, dtype=jnp.int32)

        # TODO(synk): CLIP BPE tokenizer + token_embedding are not reproduced; deterministic
        # synthetic token ids / embedding tables (and word-count name lengths) stand in.
        names = [n.replace('_', ' ') for n in predicate_labels]
        name_lens = [max(1, len(n.split())) for n in names]
        s_suf = seq_len - 1 - n_ctx
        assert max(name_lens) <= s_suf, "class-name tokens must fit inside the suffix"
        self.name_lens = jnp.asarray(name_lens, dtype=jnp.int32)

        self.tokenized_prompts = jax.random.randint(k_tok, (n_cls, seq_len), 0, 49408, dtype=jnp.int32)
        embedding = jax.random.normal(k_emb, (n_cls, seq_len, ctx_dim), dtype=self.dtype)
        self.token_prefix = embedding[:, :1, :]                 # SOS token embedding
        self.token_suffix = embedding[:, 1 + n_ctx:, :]         # class tokens, EOS, padding

        self.nc_tokenized_prompts = jax.random.randint(k_nctok, (1, seq_len), 0, 49408, dtype=jnp.int32)
        nc_embedding = jax.random.normal(k_nc, (1, seq_len, ctx_dim), dtype=self.dtype)
        self.nc_token_prefix = nc_embedding[:, :1, :]
        self.nc_token_suffix = nc_embedding[:, 1 + n_ctx:, :]

    def __call__(self, test):
        if self.n_iter > 1 and (not test):
            if self.iter_idx == 0:
                # TODO(synk): torch uses stateful torch.randperm; deterministic jax permutation here.
                self._perm_key, sub = jax.random.split(self._perm_key)
                self.select_idx = jax.random.permutation(sub, self.n_prompt)
            lo = self.iter_idx * self.prompt_bsz
            hi = (self.iter_idx + 1) * self.prompt_bsz
            batch_idx = self.select_idx[lo:hi]
            ctx = self.ctx[batch_idx]
            pos = self.pos[batch_idx]
            self.iter_idx += 1
            if self.iter_idx == self.n_iter:
                self.iter_idx = 0
        else:
            ctx = self.ctx
            pos = self.pos

        prompt_size = ctx.shape[0]
        # Reorder prompts into [end (pos==2), middle (pos==1), front (pos==0)] blocks,
        # matching the torch concatenation order along dim=1 (stable within each block).
        order = jnp.argsort(-pos, stable=True)
        ctx_r = ctx[order]
        pos_np = np.asarray(pos)
        n_end = int((pos_np == 2).sum())
        n_mid = int((pos_np == 1).sum())

        prompts3 = build_prompts(self.token_prefix, self.token_suffix, ctx_r,
                                 n_end, n_mid, self.name_lens)      # (n_cls, P*seq, D)
        prompts = prompts3.reshape(self.n_cls * prompt_size, -1, self.ctx_dim)

        tokenized_prompts = jnp.tile(self.tokenized_prompts[:, None, :],
                                     (1, prompt_size, 1)).reshape(self.n_cls * prompt_size, -1)
        if test:
            return prompts, tokenized_prompts
        nc_prompts, nc_tokenized_prompts = self.only_prefix()
        return prompts, tokenized_prompts, nc_prompts, nc_tokenized_prompts

    def only_prefix(self):
        prompt_size = self.ctx.shape[0]
        nc_tok = jnp.tile(self.nc_tokenized_prompts, (prompt_size, 1))
        # pure 'end' assembly (n_end=P, no front/middle) -> direct-store path, no MXU
        nc3 = build_prompts(self.nc_token_prefix, self.nc_token_suffix, self.ctx,
                            prompt_size, 0, jnp.ones((1,), jnp.int32))   # (1, P*seq, D)
        nc_prompts = nc3.reshape(prompt_size, -1, self.ctx_dim)
        return nc_prompts, nc_tok


# --------------------------- pure-numpy reference (mirrors torch code) -------------
def _ref_build(ctx, pos, token_prefix, token_suffix, name_lens, n_ctx):
    n_cls, _, dim = token_prefix.shape
    half = n_ctx // 2
    p = ctx.shape[0]

    ctx_end = ctx[pos == 2]
    n_end = ctx_end.shape[0]
    prefix = np.repeat(token_prefix[:, None, :, :], n_end, axis=1)
    suffix = np.repeat(token_suffix[:, None, :, :], n_end, axis=1)
    ce = np.repeat(ctx_end[None], n_cls, axis=0)
    prompts_end = np.concatenate([prefix, ce, suffix], axis=2)

    ctx_middle = ctx[pos == 1]
    n_mid = ctx_middle.shape[0]
    pm = []
    for i in range(n_cls):
        nl = int(name_lens[i])
        prefix_i = np.repeat(token_prefix[i:i + 1, None, :, :], n_mid, axis=1)
        class_i = np.repeat(token_suffix[i:i + 1, None, :nl, :], n_mid, axis=1)
        suffix_i = np.repeat(token_suffix[i:i + 1, None, nl:, :], n_mid, axis=1)
        h1 = ctx_middle[None, :, :half, :]
        h2 = ctx_middle[None, :, half:, :]
        pm.append(np.concatenate([prefix_i, h1, class_i, h2, suffix_i], axis=2))
    prompts_middle = np.concatenate(pm, axis=0)

    ctx_front = ctx[pos == 0]
    n_front = ctx_front.shape[0]
    pf = []
    for i in range(n_cls):
        nl = int(name_lens[i])
        prefix_i = np.repeat(token_prefix[i:i + 1, None, :, :], n_front, axis=1)
        class_i = np.repeat(token_suffix[i:i + 1, None, :nl, :], n_front, axis=1)
        suffix_i = np.repeat(token_suffix[i:i + 1, None, nl:, :], n_front, axis=1)
        ci = ctx_front[None]
        pf.append(np.concatenate([prefix_i, class_i, ci, suffix_i], axis=2))
    prompts_front = np.concatenate(pf, axis=0)

    prompts = np.concatenate([prompts_end, prompts_middle, prompts_front], axis=1)
    return prompts.reshape(p * n_cls, -1, dim)


if __name__ == "__main__":
    key = jax.random.PRNGKey(0)
    predicate_labels = ["on", "riding_a", "standing next to"]   # n_cls = 3

    learner = PromptLearnerPallas(predicate_labels, n_ctx=8, n_prompt=8,
                                  prompt_bsz=4, ctx_dim=128, seq_len=24, key=key)

    # ---- test=True path (deterministic, uses all prompts) ----
    prompts, tokenized_prompts = learner(test=True)
    jax.block_until_ready(prompts)

    ref = _ref_build(np.asarray(learner.ctx), np.asarray(learner.pos),
                     np.asarray(learner.token_prefix), np.asarray(learner.token_suffix),
                     np.asarray(learner.name_lens), learner.n_ctx)
    np.testing.assert_allclose(np.asarray(prompts), ref, rtol=0, atol=1e-5)

    # ---- test=False path (prompt batching + only_prefix) ----
    p2, t2, nc_prompts, nc_tok = learner(test=False)
    jax.block_until_ready((p2, nc_prompts))

    sel = np.asarray(learner.select_idx)[:learner.prompt_bsz]
    ref2 = _ref_build(np.asarray(learner.ctx)[sel], np.asarray(learner.pos)[sel],
                      np.asarray(learner.token_prefix), np.asarray(learner.token_suffix),
                      np.asarray(learner.name_lens), learner.n_ctx)
    np.testing.assert_allclose(np.asarray(p2), ref2, rtol=0, atol=1e-5)

    nc_ref = np.concatenate(
        [np.repeat(np.asarray(learner.nc_token_prefix), learner.n_prompt, axis=0),
         np.asarray(learner.ctx),
         np.repeat(np.asarray(learner.nc_token_suffix), learner.n_prompt, axis=0)],
        axis=1)
    np.testing.assert_allclose(np.asarray(nc_prompts), nc_ref, rtol=0, atol=1e-5)

    print("KERNEL_OK")
</pallas_src>

<mosaic_0001>
module attributes {stable_mosaic.version = 11 : i64} {
  func.func @kernel(%arg0: i32, %arg1: memref<4xi32, #tpu.memory_space<smem>>, %arg2: memref<2x1x128xf32, #tpu.memory_space<vmem>>, %arg3: memref<2x15x128xf32, #tpu.memory_space<vmem>>, %arg4: memref<8x8x128xf32, #tpu.memory_space<vmem>>, %arg5: memref<2x192x128xf32, #tpu.memory_space<vmem>>, %arg6: memref<128x128xf32, #tpu.memory_space<vmem>>) attributes {dimension_semantics = [#tpu.dimension_semantics<parallel>], iteration_bounds = array<i64: 2>, scalar_prefetch = 1 : i64, scratch_operands = 1 : i64, tpu.core_type = #tpu.core_type<tc>, window_params = [{transform_indices = @transform_0, window_bounds = array<i64: 2, 1, 128>}, {transform_indices = @transform_1, window_bounds = array<i64: 2, 15, 128>}, {pipeline_mode = #tpu.pipeline_mode<synchronous>, transform_indices = @transform_2, window_bounds = array<i64: 8, 8, 128>}, {transform_indices = @transform_3, window_bounds = array<i64: 2, 192, 128>}]} {
    %c0 = arith.constant 0 : index
    %c0_0 = arith.constant 0 : index
    %c0_1 = arith.constant 0 : index
    %0 = vector.load %arg2[%c0, %c0_0, %c0_1] : memref<2x1x128xf32, #tpu.memory_space<vmem>>, vector<1x1x128xf32>
    %1 = vector.shape_cast %0 : vector<1x1x128xf32> to vector<1x128xf32>
    %c0_2 = arith.constant 0 : index
    %c0_3 = arith.constant 0 : index
    %c0_4 = arith.constant 0 : index
    %2 = vector.load %arg3[%c0_2, %c0_3, %c0_4] : memref<2x15x128xf32, #tpu.memory_space<vmem>>, vector<1x15x128xf32>
    %3 = vector.shape_cast %2 : vector<1x15x128xf32> to vector<15x128xf32>
    %c0_5 = arith.constant 0 : index
    %c0_6 = arith.constant 0 : index
    %c0_7 = arith.constant 0 : index
    %4 = vector.load %arg5[%c0_5, %c0_6, %c0_7] : memref<2x192x128xf32, #tpu.memory_space<vmem>>, vector<1x1x128xf32>
    %5 = vector.shape_cast %4 : vector<1x1x128xf32> to vector<1x128xf32>
    %6 = vector.shape_cast %1 : vector<1x128xf32> to vector<1x1x128xf32>
    tpu.vector_store %arg5[%c0_5, %c0_6, %c0_7], %6 {strides = array<i32>} : memref<2x192x128xf32, #tpu.memory_space<vmem>>, vector<1x1x128xf32>,
    %c0_8 = arith.constant 0 : index
    %c0_9 = arith.constant 0 : index
    %c0_10 = arith.constant 0 : index
    %7 = vector.load %arg4[%c0_8, %c0_9, %c0_10] : memref<8x8x128xf32, #tpu.memory_space<vmem>>, vector<1x8x128xf32>
    %8 = vector.shape_cast %7 : vector<1x8x128xf32> to vector<8x128xf32>
    %c0_11 = arith.constant 0 : index
    %c1 = arith.constant 1 : index
    %c0_12 = arith.constant 0 : index
    %9 = vector.load %arg5[%c0_11, %c1, %c0_12] : memref<2x192x128xf32, #tpu.memory_space<vmem>>, vector<1x8x128xf32>
    %10 = vector.shape_cast %9 : vector<1x8x128xf32> to vector<8x128xf32>
    %11 = vector.shape_cast %8 : vector<8x128xf32> to vector<1x8x128xf32>
    tpu.vector_store %arg5[%c0_11, %c1, %c0_12], %11 {strides = array<i32>} : memref<2x192x128xf32, #tpu.memory_space<vmem>>, vector<1x8x128xf32>,
    %c0_13 = arith.constant 0 : index
    %c9 = arith.constant 9 : index
    %c0_14 = arith.constant 0 : index
    %12 = vector.load %arg5[%c0_13, %c9, %c0_14] : memref<2x192x128xf32, #tpu.memory_space<vmem>>, vector<1x15x128xf32>
    %13 = vector.shape_cast %12 : vector<1x15x128xf32> to vector<15x128xf32>
    %14 = vector.shape_cast %3 : vector<15x128xf32> to vector<1x15x128xf32>
    tpu.vector_store %arg5[%c0_13, %c9, %c0_14], %14 {strides = array<i32>} : memref<2x192x128xf32, #tpu.memory_space<vmem>>, vector<1x15x128xf32>,
    %c0_15 = arith.constant 0 : index
    %c24 = arith.constant 24 : index
    %c0_16 = arith.constant 0 : index
    %15 = vector.load %arg5[%c0_15, %c24, %c0_16] : memref<2x192x128xf32, #tpu.memory_space<vmem>>, vector<1x1x128xf32>
    %16 = vector.shape_cast %15 : vector<1x1x128xf32> to vector<1x128xf32>
    %17 = vector.shape_cast %1 : vector<1x128xf32> to vector<1x1x128xf32>
    tpu.vector_store %arg5[%c0_15, %c24, %c0_16], %17 {strides = array<i32>} : memref<2x192x128xf32, #tpu.memory_space<vmem>>, vector<1x1x128xf32>,
    %c1_17 = arith.constant 1 : index
    %c0_18 = arith.constant 0 : index
    %c0_19 = arith.constant 0 : index
    %18 = vector.load %arg4[%c1_17, %c0_18, %c0_19] : memref<8x8x128xf32, #tpu.memory_space<vmem>>, vector<1x8x128xf32>
    %19 = vector.shape_cast %18 : vector<1x8x128xf32> to vector<8x128xf32>
    %c0_20 = arith.constant 0 : index
    %c25 = arith.constant 25 : index
    %c0_21 = arith.constant 0 : index
    %20 = vector.load %arg5[%c0_20, %c25, %c0_21] : memref<2x192x128xf32, #tpu.memory_space<vmem>>, vector<1x8x128xf32>
    %21 = vector.shape_cast %20 : vector<1x8x128xf32> to vector<8x128xf32>
    %22 = vector.shape_cast %19 : vector<8x128xf32> to vector<1x8x128xf32>
    tpu.vector_store %arg5[%c0_20, %c25, %c0_21], %22 {strides = array<i32>} : memref<2x192x128xf32, #tpu.memory_space<vmem>>, vector<1x8x128xf32>,
    %c0_22 = arith.constant 0 : index
    %c33 = arith.constant 33 : index
    %c0_23 = arith.constant 0 : index
    %23 = vector.load %arg5[%c0_22, %c33, %c0_23] : memref<2x192x128xf32, #tpu.memory_space<vmem>>, vector<1x15x128xf32>
    %24 = vector.shape_cast %23 : vector<1x15x128xf32> to vector<15x128xf32>
    %25 = vector.shape_cast %3 : vector<15x128xf32> to vector<1x15x128xf32>
    tpu.vector_store %arg5[%c0_22, %c33, %c0_23], %25 {strides = array<i32>} : memref<2x192x128xf32, #tpu.memory_space<vmem>>, vector<1x15x128xf32>,
    %c0_24 = arith.constant 0 : index
    %c48 = arith.constant 48 : index
    %c0_25 = arith.constant 0 : index
    %26 = vector.load %arg5[%c0_24, %c48, %c0_25] : memref<2x192x128xf32, #tpu.memory_space<vmem>>, vector<1x1x128xf32>
    %27 = vector.shape_cast %26 : vector<1x1x128xf32> to vector<1x128xf32>
    %28 = vector.shape_cast %1 : vector<1x128xf32> to vector<1x1x128xf32>
    tpu.vector_store %arg5[%c0_24, %c48, %c0_25], %28 {strides = array<i32>} : memref<2x192x128xf32, #tpu.memory_space<vmem>>, vector<1x1x128xf32>,
    %c2 = arith.constant 2 : index
    %c0_26 = arith.constant 0 : index
    %c0_27 = arith.constant 0 : index
    %29 = vector.load %arg4[%c2, %c0_26, %c0_27] : memref<8x8x128xf32, #tpu.memory_space<vmem>>, vector<1x8x128xf32>
    %30 = vector.shape_cast %29 : vector<1x8x128xf32> to vector<8x128xf32>
    %c0_28 = arith.constant 0 : index
    %c49 = arith.constant 49 : index
    %c0_29 = arith.constant 0 : index
    %31 = vector.load %arg5[%c0_28, %c49, %c0_29] : memref<2x192x128xf32, #tpu.memory_space<vmem>>, vector<1x8x128xf32>
    %32 = vector.shape_cast %31 : vector<1x8x128xf32> to vector<8x128xf32>
    %33 = vector.shape_cast %30 : vector<8x128xf32> to vector<1x8x128xf32>
    tpu.vector_store %arg5[%c0_28, %c49, %c0_29], %33 {strides = array<i32>} : memref<2x192x128xf32, #tpu.memory_space<vmem>>, vector<1x8x128xf32>,
    %c0_30 = arith.constant 0 : index
    %c57 = arith.constant 57 : index
    %c0_31 = arith.constant 0 : index
    %34 = vector.load %arg5[%c0_30, %c57, %c0_31] : memref<2x192x128xf32, #tpu.memory_space<vmem>>, vector<1x15x128xf32>
    %35 = vector.shape_cast %34 : vector<1x15x128xf32> to vector<15x128xf32>
    %36 = vector.shape_cast %3 : vector<15x128xf32> to vector<1x15x128xf32>
    tpu.vector_store %arg5[%c0_30, %c57, %c0_31], %36 {strides = array<i32>} : memref<2x192x128xf32, #tpu.memory_space<vmem>>, vector<1x15x128xf32>,
    %c0_32 = arith.constant 0 : index
    %c72 = arith.constant 72 : index
    %c0_33 = arith.constant 0 : index
    %37 = vector.load %arg5[%c0_32, %c72, %c0_33] : memref<2x192x128xf32, #tpu.memory_space<vmem>>, vector<1x1x128xf32>
    %38 = vector.shape_cast %37 : vector<1x1x128xf32> to vector<1x128xf32>
    %39 = vector.shape_cast %1 : vector<1x128xf32> to vector<1x1x128xf32>
    tpu.vector_store %arg5[%c0_32, %c72, %c0_33], %39 {strides = array<i32>} : memref<2x192x128xf32, #tpu.memory_space<vmem>>, vector<1x1x128xf32>,
    %c3 = arith.constant 3 : index
    %c0_34 = arith.constant 0 : index
    %c0_35 = arith.constant 0 : index
    %40 = vector.load %arg4[%c3, %c0_34, %c0_35] : memref<8x8x128xf32, #tpu.memory_space<vmem>>, vector<1x8x128xf32>
    %41 = vector.shape_cast %40 : vector<1x8x128xf32> to vector<8x128xf32>
    %c0_36 = arith.constant 0 : index
    %c73 = arith.constant 73 : index
    %c0_37 = arith.constant 0 : index
    %42 = vector.load %arg5[%c0_36, %c73, %c0_37] : memref<2x192x128xf32, #tpu.memory_space<vmem>>, vector<1x8x128xf32>
    %43 = vector.shape_cast %42 : vector<1x8x128xf32> to vector<8x128xf32>
    %44 = vector.shape_cast %41 : vector<8x128xf32> to vector<1x8x128xf32>
    tpu.vector_store %arg5[%c0_36, %c73, %c0_37], %44 {strides = array<i32>} : memref<2x192x128xf32, #tpu.memory_space<vmem>>, vector<1x8x128xf32>,
    %c0_38 = arith.constant 0 : index
    %c81 = arith.constant 81 : index
    %c0_39 = arith.constant 0 : index
    %45 = vector.load %arg5[%c0_38, %c81, %c0_39] : memref<2x192x128xf32, #tpu.memory_space<vmem>>, vector<1x15x128xf32>
    %46 = vector.shape_cast %45 : vector<1x15x128xf32> to vector<15x128xf32>
    %47 = vector.shape_cast %3 : vector<15x128xf32> to vector<1x15x128xf32>
    tpu.vector_store %arg5[%c0_38, %c81, %c0_39], %47 {strides = array<i32>} : memref<2x192x128xf32, #tpu.memory_space<vmem>>, vector<1x15x128xf32>,
    %c1_40 = arith.constant 1 : index
    %c0_41 = arith.constant 0 : index
    %c0_42 = arith.constant 0 : index
    %48 = vector.load %arg2[%c1_40, %c0_41, %c0_42] : memref<2x1x128xf32, #tpu.memory_space<vmem>>, vector<1x1x128xf32>
    %49 = vector.shape_cast %48 : vector<1x1x128xf32> to vector<1x128xf32>
    %c1_43 = arith.constant 1 : index
    %c0_44 = arith.constant 0 : index
    %c0_45 = arith.constant 0 : index
    %50 = vector.load %arg3[%c1_43, %c0_44, %c0_45] : memref<2x15x128xf32, #tpu.memory_space<vmem>>, vector<1x15x128xf32>
    %51 = vector.shape_cast %50 : vector<1x15x128xf32> to vector<15x128xf32>
    %c1_46 = arith.constant 1 : index
    %c0_47 = arith.constant 0 : index
    %c0_48 = arith.constant 0 : index
    %52 = vector.load %arg5[%c1_46, %c0_47, %c0_48] : memref<2x192x128xf32, #tpu.memory_space<vmem>>, vector<1x1x128xf32>
    %53 = vector.shape_cast %52 : vector<1x1x128xf32> to vector<1x128xf32>
    %54 = vector.shape_cast %49 : vector<1x128xf32> to vector<1x1x128xf32>
    tpu.vector_store %arg5[%c1_46, %c0_47, %c0_48], %54 {strides = array<i32>} : memref<2x192x128xf32, #tpu.memory_space<vmem>>, vector<1x1x128xf32>,
    %c0_49 = arith.constant 0 : index
    %c0_50 = arith.constant 0 : index
    %c0_51 = arith.constant 0 : index
    %55 = vector.load %arg4[%c0_49, %c0_50, %c0_51] : memref<8x8x128xf32, #tpu.memory_space<vmem>>, vector<1x8x128xf32>
    %56 = vector.shape_cast %55 : vector<1x8x128xf32> to vector<8x128xf32>
    %c1_52 = arith.constant 1 : index
    %c1_53 = arith.constant 1 : index
    %c0_54 = arith.constant 0 : index
    %57 = vector.load %arg5[%c1_52, %c1_53, %c0_54] : memref<2x192x128xf32, #tpu.memory_space<vmem>>, vector<1x8x128xf32>
    %58 = vector.shape_cast %57 : vector<1x8x128xf32> to vector<8x128xf32>
    %59 = vector.shape_cast %56 : vector<8x128xf32> to vector<1x8x128xf32>
    tpu.vector_store %arg5[%c1_52, %c1_53, %c0_54], %59 {strides = array<i32>} : memref<2x192x128xf32, #tpu.memory_space<vmem>>, vector<1x8x128xf32>,
    %c1_55 = arith.constant 1 : index
    %c9_56 = arith.constant 9 : index
    %c0_57 = arith.constant 0 : index
    %60 = vector.load %arg5[%c1_55, %c9_56, %c0_57] : memref<2x192x128xf32, #tpu.memory_space<vmem>>, vector<1x15x128xf32>
    %61 = vector.shape_cast %60 : vector<1x15x128xf32> to vector<15x128xf32>
    %62 = vector.shape_cast %51 : vector<15x128xf32> to vector<1x15x128xf32>
    tpu.vector_store %arg5[%c1_55, %c9_56, %c0_57], %62 {strides = array<i32>} : memref<2x192x128xf32, #tpu.memory_space<vmem>>, vector<1x15x128xf32>,
    %c1_58 = arith.constant 1 : index
    %c24_59 = arith.constant 24 : index
    %c0_60 = arith.constant 0 : index
    %63 = vector.load %arg5[%c1_58, %c24_59, %c0_60] : memref<2x192x128xf32, #tpu.memory_space<vmem>>, vector<1x1x128xf32>
    %64 = vector.shape_cast %63 : vector<1x1x128xf32> to vector<1x128xf32>
    %65 = vector.shape_cast %49 : vector<1x128xf32> to vector<1x1x128xf32>
    tpu.vector_store %arg5[%c1_58, %c24_59, %c0_60], %65 {strides = array<i32>} : memref<2x192x128xf32, #tpu.memory_space<vmem>>, vector<1x1x128xf32>,
    %c1_61 = arith.constant 1 : index
    %c0_62 = arith.constant 0 : index
    %c0_63 = arith.constant 0 : index
    %66 = vector.load %arg4[%c1_61, %c0_62, %c0_63] : memref<8x8x128xf32, #tpu.memory_space<vmem>>, vector<1x8x128xf32>
    %67 = vector.shape_cast %66 : vector<1x8x128xf32> to vector<8x128xf32>
    %c1_64 = arith.constant 1 : index
    %c25_65 = arith.constant 25 : index
    %c0_66 = arith.constant 0 : index
    %68 = vector.load %arg5[%c1_64, %c25_65, %c0_66] : memref<2x192x128xf32, #tpu.memory_space<vmem>>, vector<1x8x128xf32>
    %69 = vector.shape_cast %68 : vector<1x8x128xf32> to vector<8x128xf32>
    %70 = vector.shape_cast %67 : vector<8x128xf32> to vector<1x8x128xf32>
    tpu.vector_store %arg5[%c1_64, %c25_65, %c0_66], %70 {strides = array<i32>} : memref<2x192x128xf32, #tpu.memory_space<vmem>>, vector<1x8x128xf32>,
    %c1_67 = arith.constant 1 : index
    %c33_68 = arith.constant 33 : index
    %c0_69 = arith.constant 0 : index
    %71 = vector.load %arg5[%c1_67, %c33_68, %c0_69] : memref<2x192x128xf32, #tpu.memory_space<vmem>>, vector<1x15x128xf32>
    %72 = vector.shape_cast %71 : vector<1x15x128xf32> to vector<15x128xf32>
    %73 = vector.shape_cast %51 : vector<15x128xf32> to vector<1x15x128xf32>
    tpu.vector_store %arg5[%c1_67, %c33_68, %c0_69], %73 {strides = array<i32>} : memref<2x192x128xf32, #tpu.memory_space<vmem>>, vector<1x15x128xf32>,
    %c1_70 = arith.constant 1 : index
    %c48_71 = arith.constant 48 : index
    %c0_72 = arith.constant 0 : index
    %74 = vector.load %arg5[%c1_70, %c48_71, %c0_72] : memref<2x192x128xf32, #tpu.memory_space<vmem>>, vector<1x1x128xf32>
    %75 = vector.shape_cast %74 : vector<1x1x128xf32> to vector<1x128xf32>
    %76 = vector.shape_cast %49 : vector<1x128xf32> to vector<1x1x128xf32>
    tpu.vector_store %arg5[%c1_70, %c48_71, %c0_72], %76 {strides = array<i32>} : memref<2x192x128xf32, #tpu.memory_space<vmem>>, vector<1x1x128xf32>,
    %c2_73 = arith.constant 2 : index
    %c0_74 = arith.constant 0 : index
    %c0_75 = arith.constant 0 : index
    %77 = vector.load %arg4[%c2_73, %c0_74, %c0_75] : memref<8x8x128xf32, #tpu.memory_space<vmem>>, vector<1x8x128xf32>
    %78 = vector.shape_cast %77 : vector<1x8x128xf32> to vector<8x128xf32>
    %c1_76 = arith.constant 1 : index
    %c49_77 = arith.constant 49 : index
    %c0_78 = arith.constant 0 : index
    %79 = vector.load %arg5[%c1_76, %c49_77, %c0_78] : memref<2x192x128xf32, #tpu.memory_space<vmem>>, vector<1x8x128xf32>
    %80 = vector.shape_cast %79 : vector<1x8x128xf32> to vector<8x128xf32>
    %81 = vector.shape_cast %78 : vector<8x128xf32> to vector<1x8x128xf32>
    tpu.vector_store %arg5[%c1_76, %c49_77, %c0_78], %81 {strides = array<i32>} : memref<2x192x128xf32, #tpu.memory_space<vmem>>, vector<1x8x128xf32>,
    %c1_79 = arith.constant 1 : index
    %c57_80 = arith.constant 57 : index
    %c0_81 = arith.constant 0 : index
    %82 = vector.load %arg5[%c1_79, %c57_80, %c0_81] : memref<2x192x128xf32, #tpu.memory_space<vmem>>, vector<1x15x128xf32>
    %83 = vector.shape_cast %82 : vector<1x15x128xf32> to vector<15x128xf32>
    %84 = vector.shape_cast %51 : vector<15x128xf32> to vector<1x15x128xf32>
    tpu.vector_store %arg5[%c1_79, %c57_80, %c0_81], %84 {strides = array<i32>} : memref<2x192x128xf32, #tpu.memory_space<vmem>>, vector<1x15x128xf32>,
    %c1_82 = arith.constant 1 : index
    %c72_83 = arith.constant 72 : index
    %c0_84 = arith.constant 0 : index
    %85 = vector.load %arg5[%c1_82, %c72_83, %c0_84] : memref<2x192x128xf32, #tpu.memory_space<vmem>>, vector<1x1x128xf32>
    %86 = vector.shape_cast %85 : vector<1x1x128xf32> to vector<1x128xf32>
    %87 = vector.shape_cast %49 : vector<1x128xf32> to vector<1x1x128xf32>
    tpu.vector_store %arg5[%c1_82, %c72_83, %c0_84], %87 {strides = array<i32>} : memref<2x192x128xf32, #tpu.memory_space<vmem>>, vector<1x1x128xf32>,
    %c3_85 = arith.constant 3 : index
    %c0_86 = arith.constant 0 : index
    %c0_87 = arith.constant 0 : index
    %88 = vector.load %arg4[%c3_85, %c0_86, %c0_87] : memref<8x8x128xf32, #tpu.memory_space<vmem>>, vector<1x8x128xf32>
    %89 = vector.shape_cast %88 : vector<1x8x128xf32> to vector<8x128xf32>
    %c1_88 = arith.constant 1 : index
    %c73_89 = arith.constant 73 : index
    %c0_90 = arith.constant 0 : index
    %90 = vector.load %arg5[%c1_88, %c73_89, %c0_90] : memref<2x192x128xf32, #tpu.memory_space<vmem>>, vector<1x8x128xf32>
    %91 = vector.shape_cast %90 : vector<1x8x128xf32> to vector<8x128xf32>
    %92 = vector.shape_cast %89 : vector<8x128xf32> to vector<1x8x128xf32>
    tpu.vector_store %arg5[%c1_88, %c73_89, %c0_90], %92 {strides = array<i32>} : memref<2x192x128xf32, #tpu.memory_space<vmem>>, vector<1x8x128xf32>,
    %c1_91 = arith.constant 1 : index
    %c81_92 = arith.constant 81 : index
    %c0_93 = arith.constant 0 : index
    %93 = vector.load %arg5[%c1_91, %c81_92, %c0_93] : memref<2x192x128xf32, #tpu.memory_space<vmem>>, vector<1x15x128xf32>
    %94 = vector.shape_cast %93 : vector<1x15x128xf32> to vector<15x128xf32>
    %95 = vector.shape_cast %51 : vector<15x128xf32> to vector<1x15x128xf32>
    tpu.vector_store %arg5[%c1_91, %c81_92, %c0_93], %95 {strides = array<i32>} : memref<2x192x128xf32, #tpu.memory_space<vmem>>, vector<1x15x128xf32>,
    %cst = arith.constant 0.000000e+00 : f32
    %96 = vector.broadcast %cst : f32 to vector<8x128xf32>
    %c0_94 = arith.constant 0 : index
    %c0_95 = arith.constant 0 : index
    %97 = vector.load %arg6[%c0_94, %c0_95] : memref<128x128xf32, #tpu.memory_space<vmem>>, vector<8x128xf32>
    tpu.vector_store %arg6[%c0_94, %c0_95], %96 {strides = array<i32>} : memref<128x128xf32, #tpu.memory_space<vmem>>, vector<8x128xf32>,
    %cst_96 = arith.constant 0.000000e+00 : f32
    %98 = vector.broadcast %cst_96 : f32 to vector<41x128xf32>
    %c87 = arith.constant 87 : index
    %c0_97 = arith.constant 0 : index
    %99 = vector.load %arg6[%c87, %c0_97] : memref<128x128xf32, #tpu.memory_space<vmem>>, vector<41x128xf32>
    tpu.vector_store %arg6[%c87, %c0_97], %98 {strides = array<i32>} : memref<128x128xf32, #tpu.memory_space<vmem>>, vector<41x128xf32>,
    %c0_98 = arith.constant 0 : index
    %c0_99 = arith.constant 0 : index
    %c0_100 = arith.constant 0 : index
    %100 = vector.load %arg4[%c0_98, %c0_99, %c0_100] : memref<8x8x128xf32, #tpu.memory_space<vmem>>, vector<1x8x128xf32>
    %101 = vector.shape_cast %100 : vector<1x8x128xf32> to vector<8x128xf32>
    %c8 = arith.constant 8 : index
    %c0_101 = arith.constant 0 : index
    %102 = vector.load %arg6[%c8, %c0_101] : memref<128x128xf32, #tpu.memory_space<vmem>>, vector<8x128xf32>
    tpu.vector_store %arg6[%c8, %c0_101], %101 {strides = array<i32>} : memref<128x128xf32, #tpu.memory_space<vmem>>, vector<8x128xf32>,
    %c1_102 = arith.constant 1 : index
    %c0_103 = arith.constant 0 : index
    %c0_104 = arith.constant 0 : index
    %103 = vector.load %arg4[%c1_102, %c0_103, %c0_104] : memref<8x8x128xf32, #tpu.memory_space<vmem>>, vector<1x8x128xf32>
    %104 = vector.shape_cast %103 : vector<1x8x128xf32> to vector<8x128xf32>
    %c16 = arith.constant 16 : index
    %c0_105 = arith.constant 0 : index
    %105 = vector.load %arg6[%c16, %c0_105] : memref<128x128xf32, #tpu.memory_space<vmem>>, vector<8x128xf32>
    tpu.vector_store %arg6[%c16, %c0_105], %104 {strides = array<i32>} : memref<128x128xf32, #tpu.memory_space<vmem>>, vector<8x128xf32>,
    %c2_106 = arith.constant 2 : index
    %c0_107 = arith.constant 0 : index
    %c0_108 = arith.constant 0 : index
    %106 = vector.load %arg4[%c2_106, %c0_107, %c0_108] : memref<8x8x128xf32, #tpu.memory_space<vmem>>, vector<1x8x128xf32>
    %107 = vector.shape_cast %106 : vector<1x8x128xf32> to vector<8x128xf32>
    %c24_109 = arith.constant 24 : index
    %c0_110 = arith.constant 0 : index
    %108 = vector.load %arg6[%c24_109, %c0_110] : memref<128x128xf32, #tpu.memory_space<vmem>>, vector<8x128xf32>
    tpu.vector_store %arg6[%c24_109, %c0_110], %107 {strides = array<i32>} : memref<128x128xf32, #tpu.memory_space<vmem>>, vector<8x128xf32>,
    %c3_111 = arith.constant 3 : index
    %c0_112 = arith.constant 0 : index
    %c0_113 = arith.constant 0 : index
    %109 = vector.load %arg4[%c3_111, %c0_112, %c0_113] : memref<8x8x128xf32, #tpu.memory_space<vmem>>, vector<1x8x128xf32>
    %110 = vector.shape_cast %109 : vector<1x8x128xf32> to vector<8x128xf32>
    %c32 = arith.constant 32 : index
    %c0_114 = arith.constant 0 : index
    %111 = vector.load %arg6[%c32, %c0_114] : memref<128x128xf32, #tpu.memory_space<vmem>>, vector<8x128xf32>
    tpu.vector_store %arg6[%c32, %c0_114], %110 {strides = array<i32>} : memref<128x128xf32, #tpu.memory_space<vmem>>, vector<8x128xf32>,
    %c4 = arith.constant 4 : index
    %c0_115 = arith.constant 0 : index
    %c0_116 = arith.constant 0 : index
    %112 = vector.load %arg4[%c4, %c0_115, %c0_116] : memref<8x8x128xf32, #tpu.memory_space<vmem>>, vector<1x8x128xf32>
    %113 = vector.shape_cast %112 : vector<1x8x128xf32> to vector<8x128xf32>
    %c40 = arith.constant 40 : index
    %c0_117 = arith.constant 0 : index
    %114 = vector.load %arg6[%c40, %c0_117] : memref<128x128xf32, #tpu.memory_space<vmem>>, vector<8x128xf32>
    tpu.vector_store %arg6[%c40, %c0_117], %113 {strides = array<i32>} : memref<128x128xf32, #tpu.memory_space<vmem>>, vector<8x128xf32>,
    %c5 = arith.constant 5 : index
    %c0_118 = arith.constant 0 : index
    %c0_119 = arith.constant 0 : index
    %115 = vector.load %arg4[%c5, %c0_118, %c0_119] : memref<8x8x128xf32, #tpu.memory_space<vmem>>, vector<1x8x128xf32>
    %116 = vector.shape_cast %115 : vector<1x8x128xf32> to vector<8x128xf32>
    %c48_120 = arith.constant 48 : index
    %c0_121 = arith.constant 0 : index
    %117 = vector.load %arg6[%c48_120, %c0_121] : memref<128x128xf32, #tpu.memory_space<vmem>>, vector<8x128xf32>
    tpu.vector_store %arg6[%c48_120, %c0_121], %116 {strides = array<i32>} : memref<128x128xf32, #tpu.memory_space<vmem>>, vector<8x128xf32>,
    %c6 = arith.constant 6 : index
    %c0_122 = arith.constant 0 : index
    %c0_123 = arith.constant 0 : index
    %118 = vector.load %arg4[%c6, %c0_122, %c0_123] : memref<8x8x128xf32, #tpu.memory_space<vmem>>, vector<1x8x128xf32>
    %119 = vector.shape_cast %118 : vector<1x8x128xf32> to vector<8x128xf32>
    %c56 = arith.constant 56 : index
    %c0_124 = arith.constant 0 : index
    %120 = vector.load %arg6[%c56, %c0_124] : memref<128x128xf32, #tpu.memory_space<vmem>>, vector<8x128xf32>
    tpu.vector_store %arg6[%c56, %c0_124], %119 {strides = array<i32>} : memref<128x128xf32, #tpu.memory_space<vmem>>, vector<8x128xf32>,
    %c7 = arith.constant 7 : index
    %c0_125 = arith.constant 0 : index
    %c0_126 = arith.constant 0 : index
    %121 = vector.load %arg4[%c7, %c0_125, %c0_126] : memref<8x8x128xf32, #tpu.memory_space<vmem>>, vector<1x8x128xf32>
    %122 = vector.shape_cast %121 : vector<1x8x128xf32> to vector<8x128xf32>
    %c64 = arith.constant 64 : index
    %c0_127 = arith.constant 0 : index
    %123 = vector.load %arg6[%c64, %c0_127] : memref<128x128xf32, #tpu.memory_space<vmem>>, vector<8x128xf32>
    tpu.vector_store %arg6[%c64, %c0_127], %122 {strides = array<i32>} : memref<128x128xf32, #tpu.memory_space<vmem>>, vector<8x128xf32>,
    %124 = tpu.iota {dimensions = array<i32: 1>} : vector<4x24xi32>
    %125 = tpu.iota {dimensions = array<i32: 0>} : vector<4x24xi32>
    %c2_i32 = arith.constant 2 : i32
    %126 = vector.broadcast %c2_i32 : i32 to vector<4x24xi32>
    %127 = arith.cmpi slt, %125, %126 : vector<4x24xi32>
    %c4_i32 = arith.constant 4 : i32
    %128 = vector.broadcast %c4_i32 : i32 to vector<4x24xi32>
    %129 = arith.addi %125, %128 : vector<4x24xi32>
    %130 = tpu.iota {dimensions = array<i32: 2>} : vector<4x24x128xi32>
    %c2_i32_128 = arith.constant 2 : i32
    %131 = arith.muli %arg0, %c2_i32_128 : i32
    %c0_i32 = arith.constant 0 : i32
    %132 = arith.addi %131, %c0_i32 : i32
    %133 = arith.index_cast %132 : i32 to index
    %134 = memref.load %arg1[%133] : memref<4xi32, #tpu.memory_space<smem>>
    %c0_129 = arith.constant 0 : index
    %c0_130 = arith.constant 0 : index
    %c0_131 = arith.constant 0 : index
    %135 = vector.load %arg2[%c0_129, %c0_130, %c0_131] : memref<2x1x128xf32, #tpu.memory_space<vmem>>, vector<1x1x128xf32>
    %136 = vector.shape_cast %135 : vector<1x1x128xf32> to vector<1x128xf32>
    %c0_132 = arith.constant 0 : index
    %c0_133 = arith.constant 0 : index
    %137 = vector.load %arg6[%c0_132, %c0_133] : memref<128x128xf32, #tpu.memory_space<vmem>>, vector<1x128xf32>
    tpu.vector_store %arg6[%c0_132, %c0_133], %136 {strides = array<i32>} : memref<128x128xf32, #tpu.memory_space<vmem>>, vector<1x128xf32>,
    %c0_134 = arith.constant 0 : index
    %c0_135 = arith.constant 0 : index
    %c0_136 = arith.constant 0 : index
    %138 = vector.load %arg3[%c0_134, %c0_135, %c0_136] : memref<2x15x128xf32, #tpu.memory_space<vmem>>, vector<1x15x128xf32>
    %139 = vector.shape_cast %138 : vector<1x15x128xf32> to vector<15x128xf32>
    %c72_137 = arith.constant 72 : index
    %c0_138 = arith.constant 0 : index
    %140 = vector.load %arg6[%c72_137, %c0_138] : memref<128x128xf32, #tpu.memory_space<vmem>>, vector<15x128xf32>
    tpu.vector_store %arg6[%c72_137, %c0_138], %139 {strides = array<i32>} : memref<128x128xf32, #tpu.memory_space<vmem>>, vector<15x128xf32>,
    %c5_i32 = arith.constant 5 : i32
    %141 = vector.broadcast %c5_i32 : i32 to vector<4x24xi32>
    %142 = arith.cmpi slt, %124, %141 : vector<4x24xi32>
    %c5_i32_139 = arith.constant 5 : i32
    %143 = arith.addi %c5_i32_139, %134 : i32
    %144 = vector.broadcast %143 : i32 to vector<4x24xi32>
    %145 = arith.cmpi slt, %124, %144 : vector<4x24xi32>
    %c4_i32_140 = arith.constant 4 : i32
    %146 = vector.broadcast %c4_i32_140 : i32 to vector<4x24xi32>
    %147 = arith.addi %124, %146 : vector<4x24xi32>
    %c9_i32 = arith.constant 9 : i32
    %148 = arith.addi %c9_i32, %134 : i32
    %149 = vector.broadcast %148 : i32 to vector<4x24xi32>
    %150 = arith.cmpi slt, %124, %149 : vector<4x24xi32>
    %151 = vector.broadcast %134 : i32 to vector<4x24xi32>
    %152 = arith.subi %124, %151 : vector<4x24xi32>
    %153 = arith.select %150, %152, %124 : vector<4x24xi1>, vector<4x24xi32>
    %154 = arith.select %145, %147, %153 : vector<4x24xi1>, vector<4x24xi32>
    %155 = arith.select %142, %124, %154 : vector<4x24xi1>, vector<4x24xi32>
    %c1_i32 = arith.constant 1 : i32
    %156 = vector.broadcast %c1_i32 : i32 to vector<4x24xi32>
    %157 = arith.cmpi slt, %124, %156 : vector<4x24xi32>
    %c1_i32_141 = arith.constant 1 : i32
    %158 = arith.addi %c1_i32_141, %134 : i32
    %159 = vector.broadcast %158 : i32 to vector<4x24xi32>
    %160 = arith.cmpi slt, %124, %159 : vector<4x24xi32>
    %c8_i32 = arith.constant 8 : i32
    %161 = vector.broadcast %c8_i32 : i32 to vector<4x24xi32>
    %162 = arith.addi %124, %161 : vector<4x24xi32>
    %c1_i32_142 = arith.constant 1 : i32
    %163 = arith.addi %c1_i32_142, %134 : i32
    %c8_i32_143 = arith.constant 8 : i32
    %164 = arith.addi %163, %c8_i32_143 : i32
    %165 = vector.broadcast %164 : i32 to vector<4x24xi32>
    %166 = arith.cmpi slt, %124, %165 : vector<4x24xi32>
    %167 = vector.broadcast %134 : i32 to vector<4x24xi32>
    %168 = arith.subi %124, %167 : vector<4x24xi32>
    %169 = arith.select %166, %168, %124 : vector<4x24xi1>, vector<4x24xi32>
    %170 = arith.select %160, %162, %169 : vector<4x24xi1>, vector<4x24xi32>
    %171 = arith.select %157, %124, %170 : vector<4x24xi1>, vector<4x24xi32>
    %172 = arith.select %127, %155, %171 : vector<4x24xi1>, vector<4x24xi32>
    %c0_i32_144 = arith.constant 0 : i32
    %173 = vector.broadcast %c0_i32_144 : i32 to vector<4x24xi32>
    %174 = arith.cmpi eq, %172, %173 : vector<4x24xi32>
    %c8_i32_145 = arith.constant 8 : i32
    %175 = vector.broadcast %c8_i32_145 : i32 to vector<4x24xi32>
    %176 = arith.cmpi sle, %172, %175 : vector<4x24xi32>
    %c8_i32_146 = arith.constant 8 : i32
    %177 = vector.broadcast %c8_i32_146 : i32 to vector<4x24xi32>
    %178 = arith.muli %129, %177 : vector<4x24xi32>
    %c8_i32_147 = arith.constant 8 : i32
    %179 = vector.broadcast %c8_i32_147 : i32 to vector<4x24xi32>
    %180 = arith.addi %179, %178 : vector<4x24xi32>
    %c1_i32_148 = arith.constant 1 : i32
    %181 = vector.broadcast %c1_i32_148 : i32 to vector<4x24xi32>
    %182 = arith.subi %172, %181 : vector<4x24xi32>
    %183 = arith.addi %180, %182 : vector<4x24xi32>
    %c1_i32_149 = arith.constant 1 : i32
    %184 = vector.broadcast %c1_i32_149 : i32 to vector<4x24xi32>
    %185 = arith.subi %172, %184 : vector<4x24xi32>
    %c8_i32_150 = arith.constant 8 : i32
    %186 = vector.broadcast %c8_i32_150 : i32 to vector<4x24xi32>
    %187 = arith.subi %185, %186 : vector<4x24xi32>
    %c72_i32 = arith.constant 72 : i32
    %188 = vector.broadcast %c72_i32 : i32 to vector<4x24xi32>
    %189 = arith.addi %188, %187 : vector<4x24xi32>
    %190 = arith.select %176, %183, %189 : vector<4x24xi1>, vector<4x24xi32>
    %c0_i32_151 = arith.constant 0 : i32
    %191 = vector.broadcast %c0_i32_151 : i32 to vector<4x24xi32>
    %192 = arith.select %174, %191, %190 : vector<4x24xi1>, vector<4x24xi32>
    %193 = vector.shape_cast %192 : vector<4x24xi32> to vector<4x24x1xi32>
    %194 = vector.broadcast %193 : vector<4x24x1xi32> to vector<4x24x128xi32>
    %195 = arith.cmpi eq, %130, %194 : vector<4x24x128xi32>
    %196 = arith.extui %195 : vector<4x24x128xi1> to vector<4x24x128xi32>
    %197 = arith.sitofp %196 : vector<4x24x128xi32> to vector<4x24x128xf32>
    %198 = vector.shape_cast %197 : vector<4x24x128xf32> to vector<96x128xf32>
    %c0_152 = arith.constant 0 : index
    %c0_153 = arith.constant 0 : index
    %199 = vector.load %arg6[%c0_152, %c0_153] : memref<128x128xf32, #tpu.memory_space<vmem>>, vector<128x128xf32>
    %cst_154 = arith.constant dense<0.000000e+00> : vector<96x128xf32>
    %200 = tpu.matmul %198, %199, %cst_154 {dimension_numbers = #tpu.dot_dimension_numbers<[1], [0], [0], [1], [0, 0, 1, 1], [], []>} : vector<96x128xf32>, vector<128x128xf32>, vector<96x128xf32> -> vector<96x128xf32>
    %c0_155 = arith.constant 0 : index
    %c96 = arith.constant 96 : index
    %c0_156 = arith.constant 0 : index
    %201 = vector.load %arg5[%c0_155, %c96, %c0_156] : memref<2x192x128xf32, #tpu.memory_space<vmem>>, vector<1x96x128xf32>
    %202 = vector.shape_cast %201 : vector<1x96x128xf32> to vector<96x128xf32>
    %203 = vector.shape_cast %200 : vector<96x128xf32> to vector<1x96x128xf32>
    tpu.vector_store %arg5[%c0_155, %c96, %c0_156], %203 {strides = array<i32>} : memref<2x192x128xf32, #tpu.memory_space<vmem>>, vector<1x96x128xf32>,
    %c2_i32_157 = arith.constant 2 : i32
    %204 = arith.muli %arg0, %c2_i32_157 : i32
    %c1_i32_158 = arith.constant 1 : i32
    %205 = arith.addi %204, %c1_i32_158 : i32
    %206 = arith.index_cast %205 : i32 to index
    %207 = memref.load %arg1[%206] : memref<4xi32, #tpu.memory_space<smem>>
    %c1_159 = arith.constant 1 : index
    %c0_160 = arith.constant 0 : index
    %c0_161 = arith.constant 0 : index
    %208 = vector.load %arg2[%c1_159, %c0_160, %c0_161] : memref<2x1x128xf32, #tpu.memory_space<vmem>>, vector<1x1x128xf32>
    %209 = vector.shape_cast %208 : vector<1x1x128xf32> to vector<1x128xf32>
    %c0_162 = arith.constant 0 : index
    %c0_163 = arith.constant 0 : index
    %210 = vector.load %arg6[%c0_162, %c0_163] : memref<128x128xf32, #tpu.memory_space<vmem>>, vector<1x128xf32>
    tpu.vector_store %arg6[%c0_162, %c0_163], %209 {strides = array<i32>} : memref<128x128xf32, #tpu.memory_space<vmem>>, vector<1x128xf32>,
    %c1_164 = arith.constant 1 : index
    %c0_165 = arith.constant 0 : index
    %c0_166 = arith.constant 0 : index
    %211 = vector.load %arg3[%c1_164, %c0_165, %c0_166] : memref<2x15x128xf32, #tpu.memory_space<vmem>>, vector<1x15x128xf32>
    %212 = vector.shape_cast %211 : vector<1x15x128xf32> to vector<15x128xf32>
    %c72_167 = arith.constant 72 : index
    %c0_168 = arith.constant 0 : index
    %213 = vector.load %arg6[%c72_167, %c0_168] : memref<128x128xf32, #tpu.memory_space<vmem>>, vector<15x128xf32>
    tpu.vector_store %arg6[%c72_167, %c0_168], %212 {strides = array<i32>} : memref<128x128xf32, #tpu.memory_space<vmem>>, vector<15x128xf32>,
    %c5_i32_169 = arith.constant 5 : i32
    %214 = vector.broadcast %c5_i32_169 : i32 to vector<4x24xi32>
    %215 = arith.cmpi slt, %124, %214 : vector<4x24xi32>
    %c5_i32_170 = arith.constant 5 : i32
    %216 = arith.addi %c5_i32_170, %207 : i32
    %217 = vector.broadcast %216 : i32 to vector<4x24xi32>
    %218 = arith.cmpi slt, %124, %217 : vector<4x24xi32>
    %c4_i32_171 = arith.constant 4 : i32
    %219 = vector.broadcast %c4_i32_171 : i32 to vector<4x24xi32>
    %220 = arith.addi %124, %219 : vector<4x24xi32>
    %c9_i32_172 = arith.constant 9 : i32
    %221 = arith.addi %c9_i32_172, %207 : i32
    %222 = vector.broadcast %221 : i32 to vector<4x24xi32>
    %223 = arith.cmpi slt, %124, %222 : vector<4x24xi32>
    %224 = vector.broadcast %207 : i32 to vector<4x24xi32>
    %225 = arith.subi %124, %224 : vector<4x24xi32>
    %226 = arith.select %223, %225, %124 : vector<4x24xi1>, vector<4x24xi32>
    %227 = arith.select %218, %220, %226 : vector<4x24xi1>, vector<4x24xi32>
    %228 = arith.select %215, %124, %227 : vector<4x24xi1>, vector<4x24xi32>
    %c1_i32_173 = arith.constant 1 : i32
    %229 = vector.broadcast %c1_i32_173 : i32 to vector<4x24xi32>
    %230 = arith.cmpi slt, %124, %229 : vector<4x24xi32>
    %c1_i32_174 = arith.constant 1 : i32
    %231 = arith.addi %c1_i32_174, %207 : i32
    %232 = vector.broadcast %231 : i32 to vector<4x24xi32>
    %233 = arith.cmpi slt, %124, %232 : vector<4x24xi32>
    %c8_i32_175 = arith.constant 8 : i32
    %234 = vector.broadcast %c8_i32_175 : i32 to vector<4x24xi32>
    %235 = arith.addi %124, %234 : vector<4x24xi32>
    %c1_i32_176 = arith.constant 1 : i32
    %236 = arith.addi %c1_i32_176, %207 : i32
    %c8_i32_177 = arith.constant 8 : i32
    %237 = arith.addi %236, %c8_i32_177 : i32
    %238 = vector.broadcast %237 : i32 to vector<4x24xi32>
    %239 = arith.cmpi slt, %124, %238 : vector<4x24xi32>
    %240 = vector.broadcast %207 : i32 to vector<4x24xi32>
    %241 = arith.subi %124, %240 : vector<4x24xi32>
    %242 = arith.select %239, %241, %124 : vector<4x24xi1>, vector<4x24xi32>
    %243 = arith.select %233, %235, %242 : vector<4x24xi1>, vector<4x24xi32>
    %244 = arith.select %230, %124, %243 : vector<4x24xi1>, vector<4x24xi32>
    %245 = arith.select %127, %228, %244 : vector<4x24xi1>, vector<4x24xi32>
    %c0_i32_178 = arith.constant 0 : i32
    %246 = vector.broadcast %c0_i32_178 : i32 to vector<4x24xi32>
    %247 = arith.cmpi eq, %245, %246 : vector<4x24xi32>
    %c8_i32_179 = arith.constant 8 : i32
    %248 = vector.broadcast %c8_i32_179 : i32 to vector<4x24xi32>
    %249 = arith.cmpi sle, %245, %248 : vector<4x24xi32>
    %c8_i32_180 = arith.constant 8 : i32
    %250 = vector.broadcast %c8_i32_180 : i32 to vector<4x24xi32>
    %251 = arith.muli %129, %250 : vector<4x24xi32>
    %c8_i32_181 = arith.constant 8 : i32
    %252 = vector.broadcast %c8_i32_181 : i32 to vector<4x24xi32>
    %253 = arith.addi %252, %251 : vector<4x24xi32>
    %c1_i32_182 = arith.constant 1 : i32
    %254 = vector.broadcast %c1_i32_182 : i32 to vector<4x24xi32>
    %255 = arith.subi %245, %254 : vector<4x24xi32>
    %256 = arith.addi %253, %255 : vector<4x24xi32>
    %c1_i32_183 = arith.constant 1 : i32
    %257 = vector.broadcast %c1_i32_183 : i32 to vector<4x24xi32>
    %258 = arith.subi %245, %257 : vector<4x24xi32>
    %c8_i32_184 = arith.constant 8 : i32
    %259 = vector.broadcast %c8_i32_184 : i32 to vector<4x24xi32>
    %260 = arith.subi %258, %259 : vector<4x24xi32>
    %c72_i32_185 = arith.constant 72 : i32
    %261 = vector.broadcast %c72_i32_185 : i32 to vector<4x24xi32>
    %262 = arith.addi %261, %260 : vector<4x24xi32>
    %263 = arith.select %249, %256, %262 : vector<4x24xi1>, vector<4x24xi32>
    %c0_i32_186 = arith.constant 0 : i32
    %264 = vector.broadcast %c0_i32_186 : i32 to vector<4x24xi32>
    %265 = arith.select %247, %264, %263 : vector<4x24xi1>, vector<4x24xi32>
    %266 = vector.shape_cast %265 : vector<4x24xi32> to vector<4x24x1xi32>
    %267 = vector.broadcast %266 : vector<4x24x1xi32> to vector<4x24x128xi32>
    %268 = arith.cmpi eq, %130, %267 : vector<4x24x128xi32>
    %269 = arith.extui %268 : vector<4x24x128xi1> to vector<4x24x128xi32>
    %270 = arith.sitofp %269 : vector<4x24x128xi32> to vector<4x24x128xf32>
    %271 = vector.shape_cast %270 : vector<4x24x128xf32> to vector<96x128xf32>
    %c0_187 = arith.constant 0 : index
    %c0_188 = arith.constant 0 : index
    %272 = vector.load %arg6[%c0_187, %c0_188] : memref<128x128xf32, #tpu.memory_space<vmem>>, vector<128x128xf32>
    %cst_189 = arith.constant dense<0.000000e+00> : vector<96x128xf32>
    %273 = tpu.matmul %271, %272, %cst_189 {dimension_numbers = #tpu.dot_dimension_numbers<[1], [0], [0], [1], [0, 0, 1, 1], [], []>} : vector<96x128xf32>, vector<128x128xf32>, vector<96x128xf32> -> vector<96x128xf32>
    %c1_190 = arith.constant 1 : index
    %c96_191 = arith.constant 96 : index
    %c0_192 = arith.constant 0 : index
    %274 = vector.load %arg5[%c1_190, %c96_191, %c0_192] : memref<2x192x128xf32, #tpu.memory_space<vmem>>, vector<1x96x128xf32>
    %275 = vector.shape_cast %274 : vector<1x96x128xf32> to vector<96x128xf32>
    %276 = vector.shape_cast %273 : vector<96x128xf32> to vector<1x96x128xf32>
    tpu.vector_store %arg5[%c1_190, %c96_191, %c0_192], %276 {strides = array<i32>} : memref<2x192x128xf32, #tpu.memory_space<vmem>>, vector<1x96x128xf32>,
    return
  }
  func.func @transform_0(%arg0: i32, %arg1: memref<4xi32, #tpu.memory_space<smem>>) -> (i32, i32, i32) {
    %c0_i32 = arith.constant 0 : i32
    %c0_i32_0 = arith.constant 0 : i32
    %c0_i32_1 = arith.constant 0 : i32
    return %arg0, %c0_i32, %c0_i32_0 : i32, i32, i32
  }
  func.func @transform_1(%arg0: i32, %arg1: memref<4xi32, #tpu.memory_space<smem>>) -> (i32, i32, i32) {
    %c0_i32 = arith.constant 0 : i32
    %c0_i32_0 = arith.constant 0 : i32
    %c0_i32_1 = arith.constant 0 : i32
    return %arg0, %c0_i32, %c0_i32_0 : i32, i32, i32
  }
  func.func @transform_2(%arg0: i32, %arg1: memref<4xi32, #tpu.memory_space<smem>>) -> (i32, i32, i32) {
    %c0_i32 = arith.constant 0 : i32
    %c0_i32_0 = arith.constant 0 : i32
    %c0_i32_1 = arith.constant 0 : i32
    %c0_i32_2 = arith.constant 0 : i32
    return %c0_i32, %c0_i32_0, %c0_i32_1 : i32, i32, i32
  }
  func.func @transform_3(%arg0: i32, %arg1: memref<4xi32, #tpu.memory_space<smem>>) -> (i32, i32, i32) {
    %c0_i32 = arith.constant 0 : i32
    %c0_i32_0 = arith.constant 0 : i32
    %c0_i32_1 = arith.constant 0 : i32
    return %arg0, %c0_i32, %c0_i32_0 : i32, i32, i32
  }
}

</mosaic_0001>

<bundles_post_ra>
// kernel: tpu_custom_call.1
= control target key start
LH: loop header
LB: loop body
LE: loop exit
PB: predicated region body
PF: predicated region fallthrough
CT: control target
= control target key end

     0   :  { %s1830_s0 = inlined_call_operand.vmem [shape: s32[4], index: 0, kind: input, shape index: {}]   ;;  %s1831_s1 = inlined_call_operand.vmem [shape: f32[4,1,128], index: 1, kind: input, shape index: {}]   ;;  %s1832_s2 = inlined_call_operand.vmem [shape: f32[4,15,128], index: 2, kind: input, shape index: {}]   ;;  %s1833_s3 = inlined_call_operand.vmem [shape: f32[8,8,128], index: 3, kind: input, shape index: {}]   ;;  %s1834_s4 = inlined_call_operand.hbm [shape: f32[4,192,128], index: 4, kind: output, shape index: {}]  }
   0x1   :  { %s9_s17 = sshll.u32 %s1830_s0, 4  ;;  %s10_s17 = int_to_ptr.vmem [resolvable:$true] %s9_s17 }
   0x2   :  { %s1322_s18 = scalar_lea.vmem %s10_s17, 16  ;;  %p1327_p1 = scmp.lt.s32.totalorder %s10_s17, %s10_s17 }
   0x3   :  { %p1323_p0 = scmp.ne.s32.totalorder %s10_s17, %s1322_s18  ;;  %p1328_p2 = scmp.lt.s32.totalorder %s1322_s18, %s1322_s18 }
   0x5   :  { %p1329_p3 = por %p1328_p2, %p1327_p1 }
   0x7   :  { %p1330_p4 = pnand %p1329_p3, %p1323_p0 }
   0x9   :  { %1333 = shalt.err (!%p1330_p4)  }
   0xa   :  { %s1400_s19 = smov [#allocation4]  }
   0xb   :  { %12 = dma.vmem_to_smem %s10_s17, 16, %s1400_s19, [#allocation3] }
   0xc   :  { %1378 = dma.done.wait [#allocation3], 16 }
   0xd   :  { %1379 = vsyncadd [#allocation3], 4294967280 }
   0xe   :  { %14 = sfence }
   0xf   :  { %15 = vsyncpa [#allocation6], 0 }
  0x10   :  { %17 = vsyncpa [#allocation6 + $0x1], 0  ;;  %s1434_s20 = smov 0   ;;  %s1436_s21 = smov 0  }
  0x11   :  { %s1438_s0 = smov 0   ;;  %s1440_s22 = smov 0  }
  0x12 LB: > { %s1455_s23 = sadd.s32 4294967295, %s1398_s22   ;;  %s942_s24 = sadd.s32 4294967294, %s1398_s22   ;;  %s1398_s22 = sphi %s1440_s22, %s1840_s22   ;;  %s1394_s0 = sphi %s1438_s0, %s1839_s0   ;;  %s1390_s21 = sphi %s1436_s21, %s1838_s21   ;;  %s1386_s20 = sphi %s1434_s20, %s1837_s20  }
  0x13   : > { %s1459_s25 = sadd.s32 1, %s1398_s22   ;;  %s103_s26 = sadd.s32 1, %s1394_s0 }
  0x14   : > { %s100_s27 = ssub.s32 %s1398_s22, %s1459_s25  ;;  %p113_p5 = scmp.ne.s32.totalorder %s1394_s0, %s1390_s21 }
  0x15   : > { %p101_p6 = scmp.eq.s32.totalorder %s100_s27, 0  ;;  %p114_p7 = scmp.eq.s32.totalorder %s1455_s23, 1 }
  0x16   : > { %p119_p8 = scmp.ne.s32.totalorder %s1390_s21, %s1386_s20  ;;  %p120_p9 = scmp.eq.s32.totalorder %s942_s24, 1 }
  0x17   : > { %s1470_s28 = scalar_select %p101_p6, %s1394_s0, %s103_s26  }
  0x18   : > { %p1472_p10 = por %p114_p7, %p113_p5  ;;  %p1476_p11 = por %p120_p9, %p119_p8 }
  0x19   : > { %p945_p12 = scmp.ge.s32.totalorder %s1398_s22, 1  ;;  %p159_p13 = scmp.lt.s32.totalorder %s1398_s22, 3 }
  0x1b   : > { %p160_p0 = pnand %p945_p12, %p159_p13 }
  0x1c   : > { %s1483_s5 = sshll.u32 (!%p160_p0), %s1455_s23, 1  ;;  %v280_v0 = vlaneseq (!%p160_p0)  ;;  %s185_s6 = sand.u32 (!%p160_p0), 1, %s1390_s21   ;;  %v1489_v1 = vld [vmem:[%s1833_s3] sm:$0xff] (!%p160_p0)  ;;  %v1494_v2 = vld [vmem:[%s1833_s3 + $0x8] sm:$0xff] (!%p160_p0)  ;;  %v1499_v3 = vld [vmem:[%s1833_s3 + $0x10] sm:$0xff] (!%p160_p0)  ;;  %v1401_v4 = vmov (!%p160_p0), 0.0  }
  0x1d   : > { %163 = sbr.rel (%p160_p0) target bundleno = 444 (0x1bc), region = 32  ;;  %s1502_s13 = sld [smem:[#allocation4 + %s1483_s5]] (!%p160_p0)  ;;  %253 = vst [vmem:[#allocation2] sm:$0xff] (!%p160_p0), %v1401_v4  ;;  %254 = vst [vmem:[#allocation2 + $0x57] sm:$0xff] (!%p160_p0), %v1401_v4  ;;  %v1508_v5 = vld [vmem:[%s1833_s3 + $0x18] sm:$0xff] (!%p160_p0)  ;;  %v1513_v6 = vld [vmem:[%s1833_s3 + $0x20] sm:$0xff] (!%p160_p0)  ;;  %v1216_v61 = vpack.c.bf16 (!%p160_p0), %v1499_v3, %v1494_v2 }
  0x1e   : > { %s574_s14 = sadd.s32 (!%p160_p0), 1, %s1483_s5  ;;  %255 = vst [vmem:[#allocation2 + $0x5f] sm:$0xff] (!%p160_p0), %v1401_v4  ;;  %256 = vst [vmem:[#allocation2 + $0x67] sm:$0xff] (!%p160_p0), %v1401_v4  ;;  %v1518_v7 = vld [vmem:[%s1833_s3 + $0x28] sm:$0xff] (!%p160_p0)  ;;  %v1520_v8 = vshrl.u32 (!%p160_p0), %v280_v0, 7  ;;  %s1276_s27 = smul.u32 (!%p160_p0), 384, %s185_s6 }
  0x1f   : > { %257 = vst [vmem:[#allocation2 + $0x6f] sm:$0xff] (!%p160_p0), %v1401_v4  ;;  %258 = vst [vmem:[#allocation2 + $0x77] sm:$0xff] (!%p160_p0), %v1401_v4  ;;  %s1522_s26 = sld [smem:[#allocation4 + %s574_s14]] (!%p160_p0)  ;;  %v1529_v9 = vld [vmem:[%s1833_s3 + $0x30] sm:$0xff] (!%p160_p0)  ;;  %v1534_v10 = vld [vmem:[%s1833_s3 + $0x38] sm:$0xff] (!%p160_p0)  ;;  %v1536_v11 = vand.u32 (!%p160_p0), 127, %v280_v0 }
  0x20   : > { %259 = vst [vmem:[#allocation2 + $0x7f] sm:$0x1] (!%p160_p0), %v1401_v4  ;;  %p189_p1 = scmp.lt.s32.totalorder (!%p160_p0), %s1483_s5, 3  ;;  %v285_v12 = vadd.s32 (!%p160_p0), 4, %v1520_v8  ;;  %s1540_s11 = scalar_lea.vmem (!%p160_p0), [#allocation5], %s1276_s27  ;;  %vm284_vm0 = vcmp.lt.s32.totalorder (!%p160_p0), %v1520_v8, 2 }
  0x21   : > { %206 = vst [vmem:[%s1540_s11 + $0x1] sm:$0xff] (!%p160_p0), %v1489_v1  ;;  %212 = vst [vmem:[%s1540_s11 + $0x19] sm:$0xff] (!%p160_p0), %v1494_v2  ;;  %vm294_vm1 = vcmp.lt.s32.totalorder (!%p160_p0), %v1536_v11, 5  ;;  %v1567_v14 = vadd.s32 (!%p160_p0), 4, %v1536_v11  ;;  %vm307_vm2 = vcmp.lt.s32.totalorder (!%p160_p0), %v1536_v11, 1  ;;  %v1573_v16 = vadd.s32 (!%p160_p0), 8, %v1536_v11 }
  0x22   : > { %218 = vst [vmem:[%s1540_s11 + $0x31] sm:$0xff] (!%p160_p0), %v1499_v3  ;;  %224 = vst [vmem:[%s1540_s11 + $0x49] sm:$0xff] (!%p160_p0), %v1508_v5  ;;  %v317_v13 = vmul.u32 (!%p160_p0), 8, %v285_v12  ;;  %v327_v52 = vsub.s32 (!%p160_p0), 0, %v1520_v8  ;;  %v342_v12 = vsub.s32 (!%p160_p0), 1, %v1520_v8 }
  0x23   : > { %957 = vst [vmem:[%s1540_s11 + $0xc1] sm:$0xff] (!%p160_p0), %v1489_v1  ;;  %962 = vst [vmem:[%s1540_s11 + $0xd9] sm:$0xff] (!%p160_p0), %v1494_v2  ;;  %s295_s12 = sadd.s32 (!%p160_p0), 5, %s1502_s13  ;;  %s299_s14 = sadd.s32 (!%p160_p0), 9, %s1502_s13  ;;  %v302_v15 = vstv (!%p160_p0), %s1502_s13 }
  0x24   : > { %967 = vst [vmem:[%s1540_s11 + $0xf1] sm:$0xff] %v1499_v3  ;;  %972 = vst [vmem:[%s1540_s11 + $0x109] sm:$0xff] %v1508_v5  ;;  %s1842_s5 = smov (!%p189_p1, %s1483_s5), 3  ;;  %v296_v17 = vstv %s295_s12  ;;  %v300_v18 = vstv %s299_s14  ;;  %v303_v19 = vsub.s32 %v1536_v11, %v302_v15  ;;  %s308_s15 = sadd.s32 1, %s1502_s13  ;;  %v1577_v20 = vadd.s32 8, %v317_v13 }
  0x25   : > { %s582_s16 = sadd.s32 5, %s1522_s26  ;;  %vm297_vm3 = vcmp.lt.s32.totalorder %v1536_v11, %v296_v17  ;;  %vm301_vm4 = vcmp.lt.s32.totalorder %v1536_v11, %v300_v18  ;;  %v309_v21 = vstv %s308_s15  ;;  %s585_s17 = sadd.s32 9, %s1522_s26  ;;  %v588_v27 = vstv %s1522_s26  ;;  %v432_v18 = vld [vmem:[#allocation2 + $0x58] sm:$0xff] }
  0x26   : > { %v583_v22 = vstv %s582_s16  ;;  %s593_s18 = sadd.s32 1, %s1522_s26  ;;  %v304_v23 = vsel %vm301_vm4, %v303_v19, %v1536_v11  ;;  %vm310_vm5 = vcmp.lt.s32.totalorder %v1536_v11, %v309_v21  ;;  %v586_v24 = vstv %s585_s17  ;;  %s1591_s24 = scalar_lea.vmem %s1831_s1, %s1842_s5 }
  0x27   : > { %vm584_vm6 = vcmp.lt.s32.totalorder %v1536_v11, %v583_v22  ;;  %s1055_s27 = sshll.u32 %s1842_s5, 4  ;;  %v305_v25 = vsel %vm297_vm3, %v1567_v14, %v304_v23  ;;  %v312_v26 = vsel %vm310_vm5, %v1573_v16, %v304_v23  ;;  %vm587_vm7 = vcmp.lt.s32.totalorder %v1536_v11, %v586_v24  ;;  %v201_v28 = vld [vmem:[%s1591_s24] sm:$0x1]  ;;  %v953_v29 = vld [vmem:[%s1591_s24 + $0x1] sm:$0x1]  ;;  %v435_v22 = vld [vmem:[#allocation2 + $0x70] sm:$0xff] }
  0x28   : > { %s1601_s9 = scalar_lea.vmem %s1832_s2, %s1055_s27  ;;  %v288_v30 = vld [vmem:[%s1591_s24] sm:$0x1]  ;;  %v306_v31 = vsel %vm294_vm1, %v1536_v11, %v305_v25  ;;  %v313_v32 = vsel %vm307_vm2, %v1536_v11, %v312_v26  ;;  %v589_v33 = vsub.s32 %v1536_v11, %v588_v27  ;;  %v594_v34 = vstv %s593_s18  ;;  %204 = vst [vmem:[%s1540_s11] sm:$0x1] %v201_v28  ;;  %209 = vst [vmem:[%s1540_s11 + $0x18] sm:$0x1] %v201_v28  ;;  %v436_v23 = vld [vmem:[#allocation2 + $0x78] sm:$0xff] }
  0x29   : > { %v1614_v35 = vld [vmem:[%s1601_s9] sm:$0xff]  ;;  %v203_v36 = vld [vmem:[%s1601_s9 + $0x8] sm:$0x7f]  ;;  %215 = vst [vmem:[%s1540_s11 + $0x30] sm:$0x1] %v201_v28  ;;  %v1622_v37 = vld [vmem:[%s1601_s9 + $0x10] sm:$0xff]  ;;  %v314_v38 = vsel %vm284_vm0, %v306_v31, %v313_v32  ;;  %vm595_vm8 = vcmp.lt.s32.totalorder %v1536_v11, %v594_v34  ;;  %v1224_v17 = vpack.c.bf16 %v1529_v9, %v1518_v7  ;;  %v1240_v27 = vpack.c.bf16 %v436_v23, %v435_v22 }
  0x2a   : > { %221 = vst [vmem:[%s1540_s11 + $0x48] sm:$0x1] %v201_v28  ;;  %956 = vst [vmem:[%s1540_s11 + $0xc0] sm:$0x1] %v953_v29  ;;  %v955_v39 = vld [vmem:[%s1601_s9 + $0x18] sm:$0x7f]  ;;  %v590_v42 = vsel %vm587_vm7, %v589_v33, %v1536_v11  ;;  %v1260_v21 = vpack.c.bf16 %v1622_v37, %v1534_v10 }
  0x2b   : > { %960 = vst [vmem:[%s1540_s11 + $0xd8] sm:$0x1] %v953_v29  ;;  %965 = vst [vmem:[%s1540_s11 + $0xf0] sm:$0x1] %v953_v29  ;;  %v291_v40 = vld [vmem:[%s1601_s9 + $0x8] sm:$0x7f]  ;;  %v591_v43 = vsel %vm584_vm6, %v1567_v14, %v590_v42  ;;  %v596_v44 = vsel %vm595_vm8, %v1573_v16, %v590_v42  ;;  %v1220_v14 = vpack.c.bf16 %v1513_v6, %v1508_v5 }
  0x2c   : > { %970 = vst [vmem:[%s1540_s11 + $0x108] sm:$0x1] %v953_v29  ;;  %289 = vst [vmem:[#allocation2] sm:$0x1] %v288_v30  ;;  %v983_v41 = vadd.s32 4294967295, %v314_v38  ;;  %v592_v47 = vsel %vm294_vm1, %v1536_v11, %v591_v43  ;;  %v597_v48 = vsel %vm307_vm2, %v1536_v11, %v596_v44  ;;  %vm316_vm9 = vcmp.le.s32.totalorder %v314_v38, 8 }
  0x2d   : > { %207 = vst [vmem:[%s1540_s11 + $0x9] sm:$0xff] %v1614_v35  ;;  %208 = vst [vmem:[%s1540_s11 + $0x11] sm:$0x7f] %v203_v36  ;;  %v598_v49 = vsel %vm284_vm0, %v592_v47, %v597_v48  ;;  %v1009_v50 = vld [vmem:[%s1591_s24 + $0x1] sm:$0x1]  ;;  %vm315_vm10 = vcmp.eq.s32.totalorder %v314_v38, 0  ;;  %v1228_v6 = vpack.c.bf16 %v1614_v35, %v1534_v10 }
  0x2e   : > { %213 = vst [vmem:[%s1540_s11 + $0x21] sm:$0xff] %v1614_v35  ;;  %214 = vst [vmem:[%s1540_s11 + $0x29] sm:$0x7f] %v203_v36  ;;  %v320_v45 = vadd.s32 %v983_v41, %v1577_v20  ;;  %v984_v46 = vadd.s32 4294967288, %v983_v41  ;;  %v1012_v53 = vadd.s32 4294967295, %v598_v49  ;;  %vm600_vm11 = vcmp.le.s32.totalorder %v598_v49, 8 }
  0x2f   : > { %219 = vst [vmem:[%s1540_s11 + $0x39] sm:$0xff] %v1614_v35  ;;  %220 = vst [vmem:[%s1540_s11 + $0x41] sm:$0x7f] %v203_v36  ;;  %v1011_v55 = vld [vmem:[%s1601_s9 + $0x18] sm:$0x7f]  ;;  %vm599_vm12 = vcmp.eq.s32.totalorder %v598_v49, 0 }
  0x30   : > { %225 = vst [vmem:[%s1540_s11 + $0x51] sm:$0xff] %v1614_v35  ;;  %226 = vst [vmem:[%s1540_s11 + $0x59] sm:$0x7f] %v203_v36  ;;  %v322_v51 = vadd.s32 72, %v984_v46  ;;  %v602_v57 = vadd.s32 %v1012_v53, %v1577_v20  ;;  %v1013_v58 = vadd.s32 4294967288, %v1012_v53  ;;  %v433_v7 = vld [vmem:[#allocation2 + $0x60] sm:$0xff] }
  0x31   : > { %958 = vst [vmem:[%s1540_s11 + $0xc9] sm:$0xff] %v1622_v37  ;;  %963 = vst [vmem:[%s1540_s11 + $0xe1] sm:$0xff] %v1622_v37  ;;  %v434_v9 = vld [vmem:[#allocation2 + $0x68] sm:$0xff]  ;;  %v357_v19 = vsub.s32 2, %v1520_v8  ;;  %v372_v10 = vsub.s32 3, %v1520_v8  ;;  %v1402_v8 = vmov 1.0  }
  0x32   : > { %968 = vst [vmem:[%s1540_s11 + $0xf9] sm:$0xff] %v1622_v37  ;;  %973 = vst [vmem:[%s1540_s11 + $0x111] sm:$0xff] %v1622_v37  ;;  %v323_v56 = vsel %vm316_vm9, %v320_v45, %v322_v51  ;;  %v604_v0 = vadd.s32 72, %v1013_v58  ;;  %v1236_v20 = vpack.c.bf16 %v434_v9, %v433_v7  ;;  %s1277_s5 = smul.u32 6144, %s1455_s23  ;;  %s871_s26 = sshll.u32 %s1540_s11, 4  ;;  %s1781_s26 = int_to_ptr.vmem [resolvable:$true] %s871_s26 }
  0x33   : > { %959 = vst [vmem:[%s1540_s11 + $0xd1] sm:$0x7f] %v955_v39  ;;  %964 = vst [vmem:[%s1540_s11 + $0xe9] sm:$0x7f] %v955_v39  ;;  %v421_v54 = vld [vmem:[#allocation2] sm:$0xff]  ;;  %v1680_v60 = vsel %vm315_vm10, 0, %v323_v56 }
  0x34   : > { %969 = vst [vmem:[%s1540_s11 + $0x101] sm:$0x7f] %v955_v39  ;;  %974 = vst [vmem:[%s1540_s11 + $0x119] sm:$0x7f] %v955_v39  ;;  %v1212_v59 = vpack.c.bf16 %v1489_v1, %v421_v54  ;;  %v328_v63 = vrot.slane %v1680_v60, %v327_v52  ;;  %v605_v4 = vsel %vm600_vm11, %v602_v57, %v604_v0  ;;  %s1779_s14 = scalar_lea.hbm %s1834_s4, %s1277_s5  ;;  %s1789_s23 = scalar_lea.sflag [#allocation6], %s185_s6 }
  0x35   : > { %293 = vst [vmem:[#allocation2 + $0x50] sm:$0x7f] %v291_v40  ;;  %577 = vst [vmem:[#allocation2] sm:$0x1] %v1009_v50  ;;  %v1686_v13 = vsel %vm599_vm12, 0, %v605_v4  ;;  %v343_v15 = vrot.slane %v1680_v60, %v342_v12  ;;  %v358_v26 = vrot.slane %v1680_v60, %v357_v19  ;;  %v373_v30 = vrot.slane %v1680_v60, %v372_v10  ;;  %s1334_s15 = scalar_lea.vmem %s1781_s26, 6144 }
  0x36   : > { %1213 = vmatprep.subr.bf16.mxu0 %v1212_v59  ;;  %334 = vbcast.lane.b32.xlu1 %v328_v63, 264  ;;  %v610_v2 = vrot.slane %v1686_v13, %v327_v52  ;;  %v625_v5 = vrot.slane %v1686_v13, %v342_v12  ;;  %v640_v25 = vrot.slane %v1686_v13, %v357_v19  ;;  %p1335_p2 = scmp.ne.s32.totalorder %s1781_s26, %s1334_s15  ;;  %s1403_s16 = smov [#allocation5]  }
  0x37   : > { %1215 = vmatpush3.bf16.msra.mxu0 %v1212_v59  ;;  %330 = vbcast.lane.b32.xlu0 %v328_v63, 256  ;;  %v655_v29 = vrot.slane %v1686_v13, %v372_v10  ;;  %s1338_s17 = sshll.u32 %s1403_s16, 4  ;;  %s1339_s17 = int_to_ptr.vmem [resolvable:$false] %s1338_s17 }
  0x38   : > { %1217 = vmatprep.subr.bf16.mxu0 %v1216_v61  ;;  %p1336_p3 = pnand %p1335_p2, %p1472_p10  ;;  %s1340_s18 = scalar_lea.vmem %s1339_s17, 12288 }
  0x39   : > { %p1341_p5 = scmp.lt.s32.totalorder %s1781_s26, %s1339_s17  ;;  %p1342_p6 = scmp.lt.s32.totalorder %s1340_s18, %s1334_s15 }
  0x3a   : > { %616 = vbcast.lane.b32.xlu1 %v610_v2, 264  ;;  %p1337_p4 = pneg %p1336_p3 }
  0x3b   : > { %1219 = vmatpush3.bf16.msra.mxu0 %v1216_v61  ;;  %338 = vbcast.lane.b32.xlu0 %v328_v63, 272  ;;  %p1343_p7 = por %p1342_p6, %p1341_p5 }
  0x3c   : > { %v431_v62 = vld [vmem:[#allocation2 + $0x50] sm:$0xff]  ;;  %v703_v3 = vld [vmem:[#allocation2] sm:$0xff]  ;;  %1221 = vmatprep.subr.bf16.mxu0 %v1220_v14 }
  0x3d   : > { %581 = vst [vmem:[#allocation2 + $0x50] sm:$0x7f] %v1011_v55  ;;  %v1244_v16 = vpack.c.bf16 %v1489_v1, %v703_v3  ;;  %v1232_v1 = vpack.c.bf16 %v432_v18, %v431_v62  ;;  %p1344_p8 = pnand %p1343_p7, %p1337_p4 }
  0x3e   : > { %620 = vbcast.lane.b32.xlu1 %v610_v2, 272 }
  0x3f   : > { %1245 = vmatprep.subr.bf16.mxu1 %v1244_v16  ;;  %1223 = vmatpush3.bf16.msra.mxu0 %v1220_v14 }
  0x40   : > { %1247 = vmatpush3.bf16.msra.mxu1 %v1244_v16  ;;  %345 = vbcast.lane.b32.xlu0 %v343_v15, 256 }
  0x41   : > { %1225 = vmatprep.subr.bf16.mxu0 %v1224_v17  ;;  %1249 = vmatprep.subr.bf16.mxu1 %v1216_v61 }
  0x42   : > { %627 = vbcast.lane.b32.xlu1 %v625_v5, 256 }
  0x43   : > { %1227 = vmatpush3.bf16.msra.mxu0 %v1224_v17 }
  0x44   : > { %1251 = vmatpush3.bf16.msra.mxu1 %v1216_v61  ;;  %349 = vbcast.lane.b32.xlu0 %v343_v15, 264  ;;  %v713_v24 = vld [vmem:[#allocation2 + $0x50] sm:$0xff] }
  0x45   : > { %1229 = vmatprep.subr.bf16.mxu0 %v1228_v6  ;;  %1253 = vmatprep.subr.bf16.mxu1 %v1220_v14  ;;  %v1264_v28 = vpack.c.bf16 %v432_v18, %v713_v24 }
  0x46   : > { %631 = vbcast.lane.b32.xlu1 %v625_v5, 264 }
  0x47   : > { %1231 = vmatpush3.bf16.msra.mxu0 %v1228_v6 }
  0x48   : > { %1255 = vmatpush3.bf16.msra.mxu1 %v1220_v14  ;;  %353 = vbcast.lane.b32.xlu0 %v343_v15, 272 }
  0x49   : > { %1233 = vmatprep.subr.bf16.mxu0 %v1232_v1  ;;  %1257 = vmatprep.subr.bf16.mxu1 %v1224_v17 }
  0x4a   : > { %635 = vbcast.lane.b32.xlu1 %v625_v5, 272 }
  0x4b   : > { %1235 = vmatpush3.bf16.msra.mxu0 %v1232_v1 }
  0x4c   : > { %1259 = vmatpush3.bf16.msra.mxu1 %v1224_v17  ;;  %612 = vbcast.lane.b32.xlu0 %v610_v2, 256 }
  0x4d   : > { %1237 = vmatprep.subr.bf16.mxu0 %v1236_v20  ;;  %1261 = vmatprep.subr.bf16.mxu1 %v1260_v21 }
  0x4e   : > { %642 = vbcast.lane.b32.xlu1 %v640_v25, 256 }
  0x4f   : > { %1239 = vmatpush3.bf16.msra.mxu0 %v1236_v20 }
  0x50   : > { %1263 = vmatpush3.bf16.msra.mxu1 %v1260_v21  ;;  %360 = vbcast.lane.b32.xlu0 %v358_v26, 256 }
  0x51   : > { %1241 = vmatprep.subr.bf16.mxu0 %v1240_v27  ;;  %1265 = vmatprep.subr.bf16.mxu1 %v1264_v28 }
  0x52   : > { %646 = vbcast.lane.b32.xlu1 %v640_v25, 264 }
  0x53   : > { %1243 = vmatpush3.bf16.msra.mxu0 %v1240_v27 }
  0x54   : > { %1267 = vmatpush3.bf16.msra.mxu1 %v1264_v28  ;;  %364 = vbcast.lane.b32.xlu0 %v358_v26, 264 }
  0x55   : > { %1269 = vmatprep.subr.bf16.mxu1 %v1236_v20 }
  0x56   : > { %650 = vbcast.lane.b32.xlu1 %v640_v25, 272 }
  0x58   : > { %1271 = vmatpush3.bf16.msra.mxu1 %v1236_v20  ;;  %368 = vbcast.lane.b32.xlu0 %v358_v26, 272 }
  0x59   : > { %1273 = vmatprep.subr.bf16.mxu1 %v1240_v27 }
  0x5a   : > { %657 = vbcast.lane.b32.xlu1 %v655_v29, 256 }
  0x5c   : > { %1275 = vmatpush3.bf16.msra.mxu1 %v1240_v27  ;;  %375 = vbcast.lane.b32.xlu0 %v373_v30, 256 }
  0x5e   : > { %661 = vbcast.lane.b32.xlu1 %v655_v29, 264 }
  0x60   : > { %379 = vbcast.lane.b32.xlu0 %v373_v30, 264 }
  0x62   : > { %665 = vbcast.lane.b32.xlu1 %v655_v29, 272 }
  0x64   : > { %383 = vbcast.lane.b32.xlu0 %v373_v30, 272 }
  0xa8   : > { %v335_v31 = vpop.permute.xlu1 %334 }
  0xa9   : > { %v331_v32 = vpop.permute.xlu0 %330  ;;  %vm386_vm13 = vcmp.eq.s32.totalorder %v1536_v11, %v335_v31 }
  0xaa   : > { %vm385_vm14 = vcmp.eq.s32.totalorder %v1536_v11, %v331_v32 }
  0xab   : > { %1144 = vmatprep.mubr.msk.f32.mxu0 %vm385_vm14, %v1402_v8 }
  0xac   : > { %1145 = vmatmul.mubr.msk.f32.vlgmr.msra.gmra.mrb[0].mxu0 %vm386_vm13, %v1402_v8  ;;  %v617_v33 = vpop.permute.xlu1 %616 }
  0xad   : > { %v339_v34 = vpop.permute.xlu0 %338  ;;  %vm668_vm4 = vcmp.eq.s32.totalorder %v1536_v11, %v617_v33 }
  0xae   : > { %vm387_vm15 = vcmp.eq.s32.totalorder %v1536_v11, %v339_v34 }
  0xaf   : > { %1147 = vmatprep.mubr.msk.f32.mxu0 %vm387_vm15, %v1402_v8 }
  0xb0   : > { %v621_v35 = vpop.permute.xlu1 %620 }
  0xb1   : > { %vm669_vm5 = vcmp.eq.s32.totalorder %v1536_v11, %v621_v35 }
  0xb2   : > { %v346_v36 = vpop.permute.xlu0 %345 }
  0xb3   : > { %vm388_vm0 = vcmp.eq.s32.totalorder %v1536_v11, %v346_v36 }
  0xb4   : > { %1148 = vmatmul.mubr.msk.f32.gmra.mrb[2].mxu0 %vm388_vm0, %v1402_v8  ;;  %v628_v37 = vpop.permute.xlu1 %627 }
  0xb5   : > { %vm670_vm7 = vcmp.eq.s32.totalorder %v1536_v11, %v628_v37 }
  0xb6   : > { %v350_v38 = vpop.permute.xlu0 %349 }
  0xb7   : > { %vm389_vm1 = vcmp.eq.s32.totalorder %v1536_v11, %v350_v38 }
  0xb8   : > { %1150 = vmatprep.mubr.msk.f32.mxu0 %vm389_vm1, %v1402_v8  ;;  %v632_v39 = vpop.permute.xlu1 %631 }
  0xb9   : > { %vm671_vm8 = vcmp.eq.s32.totalorder %v1536_v11, %v632_v39 }
  0xba   : > { %v354_v40 = vpop.permute.xlu0 %353 }
  0xbb   : > { %vm390_vm2 = vcmp.eq.s32.totalorder %v1536_v11, %v354_v40 }
  0xbc   : > { %1151 = vmatmul.mubr.msk.f32.gmra.mrb[4].mxu0 %vm390_vm2, %v1402_v8  ;;  %v636_v41 = vpop.permute.xlu1 %635 }
  0xbd   : > { %vm672_vm10 = vcmp.eq.s32.totalorder %v1536_v11, %v636_v41 }
  0xbe   : > { %v613_v42 = vpop.permute.xlu0 %612 }
  0xbf   : > { %vm667_vm3 = vcmp.eq.s32.totalorder %v1536_v11, %v613_v42 }
  0xc0   : > { %1194 = vmatprep.mubr.msk.f32.mxu1 %vm667_vm3, %v1402_v8  ;;  %v643_v43 = vpop.permute.xlu1 %642 }
  0xc1   : > { %1195 = vmatmul.mubr.msk.f32.vlgmr.msra.gmra.mrb[0].mxu1 %vm668_vm4, %v1402_v8  ;;  %vm673_vm11 = vcmp.eq.s32.totalorder %v1536_v11, %v643_v43 }
  0xc2   : > { %v361_v44 = vpop.permute.xlu0 %360  ;;  %1197 = vmatprep.mubr.msk.f32.mxu1 %vm669_vm5, %v1402_v8 }
  0xc3   : > { %vm391_vm6 = vcmp.eq.s32.totalorder %v1536_v11, %v361_v44 }
  0xc4   : > { %1153 = vmatprep.mubr.msk.f32.mxu0 %vm391_vm6, %v1402_v8  ;;  %v647_v45 = vpop.permute.xlu1 %646 }
  0xc5   : > { %1198 = vmatmul.mubr.msk.f32.gmra.mrb[2].mxu1 %vm670_vm7, %v1402_v8  ;;  %vm674_vm13 = vcmp.eq.s32.totalorder %v1536_v11, %v647_v45 }
  0xc6   : > { %v365_v46 = vpop.permute.xlu0 %364  ;;  %1200 = vmatprep.mubr.msk.f32.mxu1 %vm671_vm8, %v1402_v8 }
  0xc7   : > { %vm392_vm9 = vcmp.eq.s32.totalorder %v1536_v11, %v365_v46 }
  0xc8   : > { %1154 = vmatmul.mubr.msk.f32.gmra.mrb[6].mxu0 %vm392_vm9, %v1402_v8  ;;  %v651_v47 = vpop.permute.xlu1 %650 }
  0xc9   : > { %1201 = vmatmul.mubr.msk.f32.gmra.mrb[4].mxu1 %vm672_vm10, %v1402_v8  ;;  %vm675_vm14 = vcmp.eq.s32.totalorder %v1536_v11, %v651_v47 }
  0xca   : > { %v369_v48 = vpop.permute.xlu0 %368  ;;  %1203 = vmatprep.mubr.msk.f32.mxu1 %vm673_vm11, %v1402_v8 }
  0xcb   : > { %vm393_vm12 = vcmp.eq.s32.totalorder %v1536_v11, %v369_v48 }
  0xcc   : > { %1156 = vmatprep.mubr.msk.f32.mxu0 %vm393_vm12, %v1402_v8  ;;  %v658_v49 = vpop.permute.xlu1 %657 }
  0xcd   : > { %1204 = vmatmul.mubr.msk.f32.gmra.mrb[6].mxu1 %vm674_vm13, %v1402_v8  ;;  %vm676_vm15 = vcmp.eq.s32.totalorder %v1536_v11, %v658_v49 }
  0xce   : > { %v376_v50 = vpop.permute.xlu0 %375  ;;  %1206 = vmatprep.mubr.msk.f32.mxu1 %vm675_vm14, %v1402_v8 }
  0xcf   : > { %vm394_vm0 = vcmp.eq.s32.totalorder %v1536_v11, %v376_v50 }
  0xd0   : > { %1157 = vmatmul.mubr.msk.f32.gmra.mrb[8].mxu0 %vm394_vm0, %v1402_v8  ;;  %v662_v51 = vpop.permute.xlu1 %661 }
  0xd1   : > { %1207 = vmatmul.mubr.msk.f32.gmra.mrb[8].mxu1 %vm676_vm15, %v1402_v8  ;;  %vm677_vm1 = vcmp.eq.s32.totalorder %v1536_v11, %v662_v51 }
  0xd2   : > { %v380_v52 = vpop.permute.xlu0 %379  ;;  %1209 = vmatprep.mubr.msk.f32.mxu1 %vm677_vm1, %v1402_v8 }
  0xd3   : > { %vm395_vm2 = vcmp.eq.s32.totalorder %v1536_v11, %v380_v52 }
  0xd4   : > { %1159 = vmatprep.mubr.msk.f32.mxu0 %vm395_vm2, %v1402_v8  ;;  %v666_v53 = vpop.permute.xlu1 %665 }
  0xd5   : > { %vm678_vm3 = vcmp.eq.s32.totalorder %v1536_v11, %v666_v53 }
  0xd6   : > { %v384_v54 = vpop.permute.xlu0 %383  ;;  %1210 = vmatmul.mubr.msk.f32.gmra.mrb[10].mxu1 %vm678_vm3, %v1402_v8 }
  0xd7   : > { %vm396_vm4 = vcmp.eq.s32.totalorder %v1536_v11, %v384_v54 }
  0xd8   : > { %1160 = vmatmul.mubr.msk.f32.gmra.mrb[10].mxu0 %vm396_vm4, %v1402_v8 }
 0x17f   : > { %v1146_v55 = vpop.f32.mrb[0].mxu0 }
 0x180   : > { %563 = vst [vmem:[%s1540_s11 + $0x68] sm:$0xff] %v1146_v55  ;;  %v503_v56 = vpop.f32.mrb[1].mxu0 }
 0x181   : > { %562 = vst [vmem:[%s1540_s11 + $0x60] sm:$0xff] %v503_v56 }
 0x187   : > { %v1149_v57 = vpop.f32.mrb[2].mxu0 }
 0x188   : > { %565 = vst [vmem:[%s1540_s11 + $0x78] sm:$0xff] %v1149_v57  ;;  %v513_v58 = vpop.f32.mrb[3].mxu0 }
 0x189   : > { %564 = vst [vmem:[%s1540_s11 + $0x70] sm:$0xff] %v513_v58 }
 0x18f   : > { %v1152_v59 = vpop.f32.mrb[4].mxu0 }
 0x190   : > { %567 = vst [vmem:[%s1540_s11 + $0x88] sm:$0xff] %v1152_v59  ;;  %v523_v11 = vpop.f32.mrb[5].mxu0 }
 0x191   : > { %566 = vst [vmem:[%s1540_s11 + $0x80] sm:$0xff] %v523_v11 }
 0x194   : > { %v1196_v60 = vpop.f32.mrb[0].mxu1 }
 0x195   : > { %1039 = vst [vmem:[%s1540_s11 + $0x128] sm:$0xff] %v1196_v60  ;;  %v785_v61 = vpop.f32.mrb[1].mxu1 }
 0x196   : > { %1038 = vst [vmem:[%s1540_s11 + $0x120] sm:$0xff] %v785_v61 }
 0x198   : > { %v1199_v62 = vpop.f32.mrb[2].mxu1 }
 0x199   : > { %1041 = vst [vmem:[%s1540_s11 + $0x138] sm:$0xff] %v1199_v62  ;;  %v795_v63 = vpop.f32.mrb[3].mxu1 }
 0x19a   : > { %1040 = vst [vmem:[%s1540_s11 + $0x130] sm:$0xff] %v795_v63 }
 0x19b   : > { %v1155_v0 = vpop.f32.mrb[6].mxu0 }
 0x19c   : > { %569 = vst [vmem:[%s1540_s11 + $0x98] sm:$0xff] %v1155_v0  ;;  %v533_v4 = vpop.f32.mrb[7].mxu0  ;;  %v1202_v12 = vpop.f32.mrb[4].mxu1 }
 0x19d   : > { %568 = vst [vmem:[%s1540_s11 + $0x90] sm:$0xff] %v533_v4  ;;  %1043 = vst [vmem:[%s1540_s11 + $0x148] sm:$0xff] %v1202_v12  ;;  %v805_v13 = vpop.f32.mrb[5].mxu1 }
 0x19e   : > { %1042 = vst [vmem:[%s1540_s11 + $0x140] sm:$0xff] %v805_v13 }
 0x1a0   : > { %v1205_v14 = vpop.f32.mrb[6].mxu1 }
 0x1a1   : > { %1045 = vst [vmem:[%s1540_s11 + $0x158] sm:$0xff] %v1205_v14  ;;  %v815_v2 = vpop.f32.mrb[7].mxu1 }
 0x1a2   : > { %1044 = vst [vmem:[%s1540_s11 + $0x150] sm:$0xff] %v815_v2 }
 0x1a3   : > { %v1158_v3 = vpop.f32.mrb[8].mxu0 }
 0x1a4   : > { %571 = vst [vmem:[%s1540_s11 + $0xa8] sm:$0xff] %v1158_v3  ;;  %v543_v15 = vpop.f32.mrb[9].mxu0  ;;  %v1208_v16 = vpop.f32.mrb[8].mxu1 }
 0x1a5   : > { %570 = vst [vmem:[%s1540_s11 + $0xa0] sm:$0xff] %v543_v15  ;;  %1047 = vst [vmem:[%s1540_s11 + $0x168] sm:$0xff] %v1208_v16  ;;  %v825_v17 = vpop.f32.mrb[9].mxu1 }
 0x1a6   : > { %1046 = vst [vmem:[%s1540_s11 + $0x160] sm:$0xff] %v825_v17 }
 0x1a9   : > { %v1211_v6 = vpop.f32.mrb[10].mxu1 }
 0x1aa   : > { %1049 = vst [vmem:[%s1540_s11 + $0x178] sm:$0xff] %v1211_v6  ;;  %v835_v1 = vpop.f32.mrb[11].mxu1 }
 0x1ab   : > { %v1161_v5 = vpop.f32.mrb[10].mxu0  ;;  %1048 = vst [vmem:[%s1540_s11 + $0x170] sm:$0xff] %v835_v1 }
 0x1ac   : > { %573 = vst [vmem:[%s1540_s11 + $0xb8] sm:$0xff] %v1161_v5  ;;  %v553_v18 = vpop.f32.mrb[11].mxu0 }
 0x1ad   : > { %572 = vst [vmem:[%s1540_s11 + $0xb0] sm:$0xff] %v553_v18 }
 0x1ae   : > { %1347 = shalt.err (!%p1344_p8)
}
 0x1af   : > { %s1348_s6 = scalar_lea.hbm %s1779_s14, 6144  ;;  %s1352_s19 = scalar_lea.hbm %s1834_s4, 12288 }
 0x1b0   : > { %p1349_p9 = scmp.ne.s32.totalorder %s1779_s14, %s1348_s6  ;;  %p1353_p0 = scmp.lt.u32.totalorder %s1779_s14, %s1834_s4 }
 0x1b1   : > { %p1354_p1 = scmp.lt.u32.totalorder %s1352_s19, %s1348_s6  ;;  %p1356_p3 = scmp.lt.u32.totalorder %s1348_s6, %s1779_s14 }
 0x1b2   : > { %p1350_p12 = pnand %p1349_p9, %p1472_p10 }
 0x1b3   : > { %p1355_p2 = por %p1354_p1, %p1353_p0 }
 0x1b4   : > { %p1351_p13 = pneg %p1350_p12 }
 0x1b5   : > { %p1357_p4 = por %p1356_p3, %p1355_p2 }
 0x1b7   : > { %p1358_p5 = pnand %p1357_p4, %p1351_p13 }
 0x1b9   : > { %1361 = shalt.err (!%p1358_p5)
}
 0x1ba   : > { %s1404_s7 = smov 128   ;;  %s1405_s8 = smov 8  }
 0x1bb   : > { %1278 = dma.vmem_to_hbm [thread:$0]  (%p1472_p10), %s1781_s26, 6144, %s1779_s14, %s1789_s23, %s1404_s7, %s1404_s7, %s1405_s8  }
 0x1bc PF: > { %p1284_p6 = scmp.ge.s32.totalorder %s1398_s22, 2  ;;  %s886_s9 = sand.u32 1, %s1386_s20  }
 0x1bd   : > { %s887_s5 = scalar_lea.sflag [#allocation6], %s886_s9 }
 0x1be   : > { %p1281_p7 = pnand %p1284_p6, %p1476_p11 }
 0x1c0   : > { %1381 = dma.done.wait (!%p1281_p7), %s887_s5, 6144  }
 0x1c1   : > { %1383 = vsyncadd (!%p1281_p7), %s887_s5, 4294961152  ;;  %p20_p8 = scmp.ge.s32.totalorder %s1459_s25, 4   ;;  %s1837_s20 = smov %s1390_s21 }
 0x1c2   : > { %s1838_s21 = smov %s1394_s0  ;;  %s1839_s0 = smov %s1470_s28 }
 0x1c3   : > { %s1840_s22 = smov %s1459_s25  ;;  %22 = sbr.rel (!%p20_p8) target bundleno = 18 (0x12), region = 80 }
 0x1ca   :  { %892 = vsyncpa [#allocation6], 1 }
 0x1cb   :  { %894 = vsyncpa [#allocation6 + $0x1], 1 }

</bundles_post_ra>
